<compile_context>
chip_gen: v7x
topology: tpu7x:2x2x1
jax: 0.10.0
libtpu: 0.0.40
codegen_flags: <defaults>
</compile_context>

<pallas_src>
import numpy as np
import jax
import jax.numpy as jnp
from jax.experimental import pallas as pl
from jax.experimental.pallas import tpu as pltpu


LEAKY_SLOPE = 0.01  # PyTorch LeakyReLU default negative_slope


def _leaky_relu(x):
    return jnp.where(x > 0, x, LEAKY_SLOPE * x)


def mlp_kernel(obs_ref, act_ref, w1o_ref, w1a_ref, b1_ref,
               w2_ref, b2_ref, w3_ref, b3_ref, o_ref):
    """One batch tile of the MLP forward. MXU operands bf16, all accum/VPU math f32.

    Note on edge tiles (B % tb != 0): out-of-range rows hold whatever Pallas reads
    for the padded region; that is harmless because every op here is strictly
    row-wise and OOB output rows are dropped on writeback. Do NOT add a
    cross-row reduction without masking those rows first.
    """
    # In-kernel bf16 cast of the dominant streamed operands (hides under the DMA).
    obs_bf = obs_ref[...].astype(jnp.bfloat16)
    act_bf = act_ref[...].astype(jnp.bfloat16)

    # Layer 1: split matmul replaces cat([obs, act], 1) @ W1  (no concat in HBM).
    h1 = jnp.dot(obs_bf, w1o_ref[...], preferred_element_type=jnp.float32)
    h1 = h1 + jnp.dot(act_bf, w1a_ref[...], preferred_element_type=jnp.float32)
    h1 = _leaky_relu(h1 + b1_ref[...])                      # f32 VPU math

    # Layer 2: Linear(H, H) + LeakyReLU (Dropout = identity in eval mode).
    h2 = jnp.dot(h1.astype(jnp.bfloat16), w2_ref[...],
                 preferred_element_type=jnp.float32)
    h2 = _leaky_relu(h2 + b2_ref[...])

    # Output layer Linear(H, 1): VPU multiply + lane reduction (avoids a 64x1 MXU
    # matmul and keeps the output store a tiny (TB,1) block).
    out = jnp.sum(h2 * w3_ref[...], axis=-1, keepdims=True) + b3_ref[...]
    o_ref[...] = out.astype(o_ref.dtype)


def fully_connected_mlp_forward(obs, act, params, *, block_rows=4096):
    """obs: (B, C, H, W) float32 (NCHW, flattened inside), act: (B, A) float32.

    block_rows: batch-tile size. Default 4096 amortizes per-grid-step overhead on
    v5e/v6e/v7x (sweep 2048-8192 for the last few %). Small batches collapse to a
    single grid step. On v7x, prefer a block_rows that yields >=2 grid steps for
    large B so both TensorCores are used.
    """
    B = obs.shape[0]
    flat_obs = obs.reshape(B, -1)                       # glue: view/flatten (free)

    w1, b1, w2, b2, w3, b3 = params
    d_obs = flat_obs.shape[1]
    d_act = act.shape[1]
    H = w1.shape[1]
    assert w1.shape[0] == d_obs + d_act

    # Split W1 so the concatenated (B, d_obs+d_act) tensor never exists in HBM.
    # Weights are tiny + VMEM-resident: wrapper-side bf16 cast here is negligible.
    w1o_bf = w1[:d_obs, :].astype(jnp.bfloat16)
    w1a_bf = w1[d_obs:, :].astype(jnp.bfloat16)
    w2_bf = w2.astype(jnp.bfloat16)
    w3_row = w3.reshape(1, H).astype(jnp.float32)       # (H,1) -> (1,H) row
    b3_2d = b3.reshape(1, 1).astype(jnp.float32)

    # Batch tile: as large as possible (amortizes ~0.35 us/step overhead), clamped
    # to B for small batches, multiple-of-8 sublanes when tiling.
    tb = min(block_rows, B)
    if tb < B and tb % 8 != 0:
        tb = max(8, (tb // 8) * 8)
    grid = (pl.cdiv(B, tb),)

    batch_map = lambda i: (i, 0)
    resident_map = lambda i: (0, 0)      # weights/biases: same block every step

    in_specs = [
        pl.BlockSpec((tb, d_obs), batch_map),      # obs  (f32, cast in-kernel)
        pl.BlockSpec((tb, d_act), batch_map),      # act  (f32, cast in-kernel)
        pl.BlockSpec((d_obs, H), resident_map),    # W1_obs (bf16)
        pl.BlockSpec((d_act, H), resident_map),    # W1_act (bf16)
        pl.BlockSpec((1, H), resident_map),        # b1 (f32)
        pl.BlockSpec((H, H), resident_map),        # W2 (bf16)
        pl.BlockSpec((1, H), resident_map),        # b2 (f32)
        pl.BlockSpec((1, H), resident_map),        # W3 row (f32)
        pl.BlockSpec((1, 1), resident_map),        # b3 (f32)
    ]
    out_spec = pl.BlockSpec((tb, 1), batch_map)

    # Cost: obs/act streamed at 4 B/elem (f32, single pass), weights one pass.
    flops = 2 * B * (d_obs * H + d_act * H + H * H + H)
    bytes_accessed = (B * (d_obs + d_act) * 4 + B * 4
                      + ((d_obs + d_act) * H + H * H) * 2
                      + (3 * H + 1) * 4)
    cost = pl.CostEstimate(flops=flops, transcendentals=0,
                           bytes_accessed=int(bytes_accessed))

    out = pl.pallas_call(
        mlp_kernel,
        out_shape=jax.ShapeDtypeStruct((B, 1), jnp.float32),
        grid=grid,
        in_specs=in_specs,
        out_specs=out_spec,
        compiler_params=pltpu.CompilerParams(
            dimension_semantics=("parallel",),     # shard batch across TCs (v7x)
            # Default 4096-row f32 obs tile: ~4 MiB x 2 buffers + ~0.1 MiB weights
            # << 32 MiB, safe on v5e (16 MiB default would be tight) through v7x.
            vmem_limit_bytes=32 * 1024 * 1024,
        ),
        cost_estimate=cost,
    )(flat_obs, act, w1o_bf, w1a_bf, b1, w2_bf, b2, w3_row, b3_2d)
    return out


def init_params(key, input_dim, h_size=64):
    """Deterministic synthetic init (PyTorch-Linear-like uniform bounds)."""
    keys = jax.random.split(key, 6)

    def lin(kw, kb, fan_in, fan_out):
        bound = 1.0 / np.sqrt(fan_in)
        w = jax.random.uniform(kw, (fan_in, fan_out), jnp.float32, -bound, bound)
        b = jax.random.uniform(kb, (1, fan_out), jnp.float32, -bound, bound)
        return w, b

    w1, b1 = lin(keys[0], keys[1], input_dim, h_size)
    w2, b2 = lin(keys[2], keys[3], h_size, h_size)
    w3, b3 = lin(keys[4], keys[5], h_size, 1)
    return (w1, b1, w2, b2, w3, b3)


def reference_forward_f32(obs, act, params):
    """Pure-JAX f32 reference mirroring the torch module (dropout in eval mode)."""
    w1, b1, w2, b2, w3, b3 = params
    x = jnp.concatenate([obs.reshape(obs.shape[0], -1), act], axis=1)
    h1 = _leaky_relu(x @ w1 + b1)
    h2 = _leaky_relu(h1 @ w2 + b2)
    return h2 @ w3 + b3


def reference_forward_bf16(obs, act, params):
    """Reference with the same bf16 MXU-operand rounding the kernel uses (f32 accum)."""
    w1, b1, w2, b2, w3, b3 = params
    B = obs.shape[0]
    xo = obs.reshape(B, -1)
    d_obs = xo.shape[1]
    bf = lambda a: a.astype(jnp.bfloat16).astype(jnp.float32)
    h1 = _leaky_relu(bf(xo) @ bf(w1[:d_obs]) + bf(act) @ bf(w1[d_obs:]) + b1)
    h2 = _leaky_relu(bf(h1) @ bf(w2) + b2)
    return h2 @ w3 + b3


if __name__ == "__main__":
    # Module-consistent shapes: obs is image-like NCHW, act is a flat vector.
    B = 256
    obs_shape = (4, 8, 8)    # C, H, W  -> prod = 256 (lane-aligned)
    act_dim = 8
    h_size = 64
    input_dim = int(np.prod(obs_shape)) + act_dim   # 264

    key = jax.random.PRNGKey(0)
    k_obs, k_act, k_params = jax.random.split(key, 3)
    obs = jax.random.normal(k_obs, (B,) + obs_shape, dtype=jnp.float32)
    act = jax.random.normal(k_act, (B, act_dim), dtype=jnp.float32)
    params = init_params(k_params, input_dim, h_size)

    # Default (perf) config: small batch -> tb = B, grid = (1,) (no useless steps).
    out = fully_connected_mlp_forward(obs, act, params)
    out = jax.block_until_ready(out)
    assert out.shape == (B, 1), out.shape

    ref_bf16 = reference_forward_bf16(obs, act, params)
    ref_f32 = reference_forward_f32(obs, act, params)

    # Tight check vs. a reference with identical bf16 operand rounding.
    np.testing.assert_allclose(np.asarray(out), np.asarray(ref_bf16),
                               rtol=5e-3, atol=5e-3)
    # Looser sanity check vs. the full-f32 torch-equivalent reference.
    np.testing.assert_allclose(np.asarray(out), np.asarray(ref_f32),
                               rtol=5e-2, atol=5e-2)

    # Correctness-only exercise of the multi-step pipelined grid (NOT a perf
    # configuration; production should use the large default block_rows).
    out_tiled = jax.block_until_ready(
        fully_connected_mlp_forward(obs, act, params, block_rows=64))
    np.testing.assert_allclose(np.asarray(out_tiled), np.asarray(ref_bf16),
                               rtol=5e-3, atol=5e-3)

    print("KERNEL_OK")
</pallas_src>

<mosaic_0001>
module attributes {stable_mosaic.version = 11 : i64} {
  func.func @mlp_kernel(%arg0: i32, %arg1: memref<256x256xf32, #tpu.memory_space<vmem>>, %arg2: memref<256x8xf32, #tpu.memory_space<vmem>>, %arg3: memref<256x64xbf16, #tpu.memory_space<vmem>>, %arg4: memref<8x64xbf16, #tpu.memory_space<vmem>>, %arg5: memref<1x64xf32, #tpu.memory_space<vmem>>, %arg6: memref<64x64xbf16, #tpu.memory_space<vmem>>, %arg7: memref<1x64xf32, #tpu.memory_space<vmem>>, %arg8: memref<1x64xf32, #tpu.memory_space<vmem>>, %arg9: memref<1x1xf32, #tpu.memory_space<vmem>>, %arg10: memref<256x1xf32, #tpu.memory_space<vmem>>) attributes {dimension_semantics = [#tpu.dimension_semantics<parallel>], iteration_bounds = array<i64: 1>, scalar_prefetch = 0 : i64, scratch_operands = 0 : i64, tpu.core_type = #tpu.core_type<tc>, window_params = [{transform_indices = @transform_0, window_bounds = array<i64: 256, 256>}, {transform_indices = @transform_1, window_bounds = array<i64: 256, 8>}, {pipeline_mode = #tpu.pipeline_mode<synchronous>, transform_indices = @transform_2, window_bounds = array<i64: 256, 64>}, {pipeline_mode = #tpu.pipeline_mode<synchronous>, transform_indices = @transform_3, window_bounds = array<i64: 8, 64>}, {pipeline_mode = #tpu.pipeline_mode<synchronous>, transform_indices = @transform_4, window_bounds = array<i64: 1, 64>}, {pipeline_mode = #tpu.pipeline_mode<synchronous>, transform_indices = @transform_5, window_bounds = array<i64: 64, 64>}, {pipeline_mode = #tpu.pipeline_mode<synchronous>, transform_indices = @transform_6, window_bounds = array<i64: 1, 64>}, {pipeline_mode = #tpu.pipeline_mode<synchronous>, transform_indices = @transform_7, window_bounds = array<i64: 1, 64>}, {pipeline_mode = #tpu.pipeline_mode<synchronous>, transform_indices = @transform_8, window_bounds = array<i64: 1, 1>}, {transform_indices = @transform_9, window_bounds = array<i64: 256, 1>}]} {
    %c0 = arith.constant 0 : index
    %c0_0 = arith.constant 0 : index
    %0 = vector.load %arg1[%c0, %c0_0] : memref<256x256xf32, #tpu.memory_space<vmem>>, vector<256x256xf32>
    %1 = arith.truncf %0 : vector<256x256xf32> to vector<256x256xbf16>
    %c0_1 = arith.constant 0 : index
    %c0_2 = arith.constant 0 : index
    %2 = vector.load %arg2[%c0_1, %c0_2] : memref<256x8xf32, #tpu.memory_space<vmem>>, vector<256x8xf32>
    %3 = arith.truncf %2 : vector<256x8xf32> to vector<256x8xbf16>
    %c0_3 = arith.constant 0 : index
    %c0_4 = arith.constant 0 : index
    %4 = vector.load %arg3[%c0_3, %c0_4] : memref<256x64xbf16, #tpu.memory_space<vmem>>, vector<256x64xbf16>
    %cst = arith.constant dense<0.000000e+00> : vector<256x64xf32>
    %5 = tpu.matmul %1, %4, %cst {dimension_numbers = #tpu.dot_dimension_numbers<[1], [0], [0], [1], [0, 0, 1, 1], [], []>} : vector<256x256xbf16>, vector<256x64xbf16>, vector<256x64xf32> -> vector<256x64xf32>
    %c0_5 = arith.constant 0 : index
    %c0_6 = arith.constant 0 : index
    %6 = vector.load %arg4[%c0_5, %c0_6] : memref<8x64xbf16, #tpu.memory_space<vmem>>, vector<8x64xbf16>
    %cst_7 = arith.constant dense<0.000000e+00> : vector<256x64xf32>
    %7 = tpu.matmul %3, %6, %cst_7 {dimension_numbers = #tpu.dot_dimension_numbers<[1], [0], [0], [1], [0, 0, 1, 1], [], []>} : vector<256x8xbf16>, vector<8x64xbf16>, vector<256x64xf32> -> vector<256x64xf32>
    %8 = arith.addf %5, %7 : vector<256x64xf32>
    %c0_8 = arith.constant 0 : index
    %c0_9 = arith.constant 0 : index
    %9 = vector.load %arg5[%c0_8, %c0_9] : memref<1x64xf32, #tpu.memory_space<vmem>>, vector<1x64xf32>
    %10 = vector.broadcast %9 : vector<1x64xf32> to vector<256x64xf32>
    %11 = arith.addf %8, %10 : vector<256x64xf32>
    %cst_10 = arith.constant 0.000000e+00 : f32
    %12 = vector.broadcast %cst_10 : f32 to vector<256x64xf32>
    %13 = arith.cmpf ogt, %11, %12 : vector<256x64xf32>
    %cst_11 = arith.constant 0.00999999977 : f32
    %14 = vector.broadcast %cst_11 : f32 to vector<256x64xf32>
    %15 = arith.mulf %14, %11 : vector<256x64xf32>
    %16 = arith.select %13, %11, %15 : vector<256x64xi1>, vector<256x64xf32>
    %17 = arith.truncf %16 : vector<256x64xf32> to vector<256x64xbf16>
    %c0_12 = arith.constant 0 : index
    %c0_13 = arith.constant 0 : index
    %18 = vector.load %arg6[%c0_12, %c0_13] : memref<64x64xbf16, #tpu.memory_space<vmem>>, vector<64x64xbf16>
    %cst_14 = arith.constant dense<0.000000e+00> : vector<256x64xf32>
    %19 = tpu.matmul %17, %18, %cst_14 {dimension_numbers = #tpu.dot_dimension_numbers<[1], [0], [0], [1], [0, 0, 1, 1], [], []>} : vector<256x64xbf16>, vector<64x64xbf16>, vector<256x64xf32> -> vector<256x64xf32>
    %c0_15 = arith.constant 0 : index
    %c0_16 = arith.constant 0 : index
    %20 = vector.load %arg7[%c0_15, %c0_16] : memref<1x64xf32, #tpu.memory_space<vmem>>, vector<1x64xf32>
    %21 = vector.broadcast %20 : vector<1x64xf32> to vector<256x64xf32>
    %22 = arith.addf %19, %21 : vector<256x64xf32>
    %cst_17 = arith.constant 0.000000e+00 : f32
    %23 = vector.broadcast %cst_17 : f32 to vector<256x64xf32>
    %24 = arith.cmpf ogt, %22, %23 : vector<256x64xf32>
    %cst_18 = arith.constant 0.00999999977 : f32
    %25 = vector.broadcast %cst_18 : f32 to vector<256x64xf32>
    %26 = arith.mulf %25, %22 : vector<256x64xf32>
    %27 = arith.select %24, %22, %26 : vector<256x64xi1>, vector<256x64xf32>
    %c0_19 = arith.constant 0 : index
    %c0_20 = arith.constant 0 : index
    %28 = vector.load %arg8[%c0_19, %c0_20] : memref<1x64xf32, #tpu.memory_space<vmem>>, vector<1x64xf32>
    %29 = vector.broadcast %28 : vector<1x64xf32> to vector<256x64xf32>
    %30 = arith.mulf %27, %29 : vector<256x64xf32>
    %cst_21 = arith.constant dense<0.000000e+00> : vector<256xf32>
    %31 = vector.multi_reduction <add>, %30, %cst_21 [1] : vector<256x64xf32> to vector<256xf32>
    %32 = vector.shape_cast %31 : vector<256xf32> to vector<256x1xf32>
    %c0_22 = arith.constant 0 : index
    %c0_23 = arith.constant 0 : index
    %33 = vector.load %arg9[%c0_22, %c0_23] : memref<1x1xf32, #tpu.memory_space<vmem>>, vector<1x1xf32>
    %34 = vector.broadcast %33 : vector<1x1xf32> to vector<256x1xf32>
    %35 = arith.addf %32, %34 : vector<256x1xf32>
    %c0_24 = arith.constant 0 : index
    %c0_25 = arith.constant 0 : index
    %36 = vector.load %arg10[%c0_24, %c0_25] : memref<256x1xf32, #tpu.memory_space<vmem>>, vector<256x1xf32>
    tpu.vector_store %arg10[%c0_24, %c0_25], %35 {strides = array<i32>} : memref<256x1xf32, #tpu.memory_space<vmem>>, vector<256x1xf32>,
    return
  }
  func.func @transform_0(%arg0: i32) -> (i32, i32) {
    %c0_i32 = arith.constant 0 : i32
    %c0_i32_0 = arith.constant 0 : i32
    return %arg0, %c0_i32 : i32, i32
  }
  func.func @transform_1(%arg0: i32) -> (i32, i32) {
    %c0_i32 = arith.constant 0 : i32
    %c0_i32_0 = arith.constant 0 : i32
    return %arg0, %c0_i32 : i32, i32
  }
  func.func @transform_2(%arg0: i32) -> (i32, i32) {
    %c0_i32 = arith.constant 0 : i32
    %c0_i32_0 = arith.constant 0 : i32
    %c0_i32_1 = arith.constant 0 : i32
    return %c0_i32, %c0_i32_0 : i32, i32
  }
  func.func @transform_3(%arg0: i32) -> (i32, i32) {
    %c0_i32 = arith.constant 0 : i32
    %c0_i32_0 = arith.constant 0 : i32
    %c0_i32_1 = arith.constant 0 : i32
    return %c0_i32, %c0_i32_0 : i32, i32
  }
  func.func @transform_4(%arg0: i32) -> (i32, i32) {
    %c0_i32 = arith.constant 0 : i32
    %c0_i32_0 = arith.constant 0 : i32
    %c0_i32_1 = arith.constant 0 : i32
    return %c0_i32, %c0_i32_0 : i32, i32
  }
  func.func @transform_5(%arg0: i32) -> (i32, i32) {
    %c0_i32 = arith.constant 0 : i32
    %c0_i32_0 = arith.constant 0 : i32
    %c0_i32_1 = arith.constant 0 : i32
    return %c0_i32, %c0_i32_0 : i32, i32
  }
  func.func @transform_6(%arg0: i32) -> (i32, i32) {
    %c0_i32 = arith.constant 0 : i32
    %c0_i32_0 = arith.constant 0 : i32
    %c0_i32_1 = arith.constant 0 : i32
    return %c0_i32, %c0_i32_0 : i32, i32
  }
  func.func @transform_7(%arg0: i32) -> (i32, i32) {
    %c0_i32 = arith.constant 0 : i32
    %c0_i32_0 = arith.constant 0 : i32
    %c0_i32_1 = arith.constant 0 : i32
    return %c0_i32, %c0_i32_0 : i32, i32
  }
  func.func @transform_8(%arg0: i32) -> (i32, i32) {
    %c0_i32 = arith.constant 0 : i32
    %c0_i32_0 = arith.constant 0 : i32
    %c0_i32_1 = arith.constant 0 : i32
    return %c0_i32, %c0_i32_0 : i32, i32
  }
  func.func @transform_9(%arg0: i32) -> (i32, i32) {
    %c0_i32 = arith.constant 0 : i32
    %c0_i32_0 = arith.constant 0 : i32
    return %arg0, %c0_i32 : i32, i32
  }
}

</mosaic_0001>

<bundles_post_ra>
// kernel: tpu_custom_call.1
= control target key start
LH: loop header
LB: loop body
LE: loop exit
PB: predicated region body
PF: predicated region fallthrough
CT: control target
= control target key end

     0   :  { %s2374_s0 = inlined_call_operand.hbm [shape: f32[256,256], index: 0, kind: input, shape index: {}]   ;;  %s2375_s1 = inlined_call_operand.vmem [shape: f32[256,8], index: 1, kind: input, shape index: {}]   ;;  %s2376_s2 = inlined_call_operand.vmem [shape: bf16[256,64], index: 2, kind: input, shape index: {}]   ;;  %s2377_s3 = inlined_call_operand.vmem [shape: bf16[8,64], index: 3, kind: input, shape index: {}]   ;;  %s2378_s4 = inlined_call_operand.vmem [shape: f32[1,64], index: 4, kind: input, shape index: {}]   ;;  %s2379_s5 = inlined_call_operand.vmem [shape: bf16[64,64], index: 5, kind: input, shape index: {}]   ;;  %s2380_s6 = inlined_call_operand.vmem [shape: f32[1,64], index: 6, kind: input, shape index: {}]   ;;  %s2381_s7 = inlined_call_operand.vmem [shape: f32[1,64], index: 7, kind: input, shape index: {}]   ;;  %s2382_s8 = inlined_call_operand.<no memory space> [shape: f32[1,1], index: 8, kind: input, shape index: {}]   ;;  %s2383_s9 = inlined_call_operand.vmem [shape: f32[256,1], index: 9, kind: output, shape index: {}]  }
   0x1   :  { %v14_v0 = vstv %s2382_s8 }
   0x2   :  { %15 = vst [vmem:[#allocation2] sm:$0x1] %v14_v0 }
   0x3   :  { %16 = vsyncpa [#allocation4], 0  ;;  %s1732_s11 = smov [#allocation3]   ;;  %s1708_s15 = scalar_lea.hbm %s2374_s0, 8192 }
   0x4   :  { %s22_s12 = sshll.u32 %s1732_s11, 4  ;;  %p1709_p0 = scmp.ne.s32.totalorder %s2374_s0, %s1708_s15  ;;  %s23_s12 = int_to_ptr.vmem [resolvable:$true] %s22_s12 }
   0x5   :  { %p1712_p1 = scmp.lt.u32.totalorder %s1708_s15, %s2374_s0 }
   0x7   :  { %p1714_p2 = pnand %p1712_p1, %p1709_p0 }
   0x9   :  { %1717 = shalt.err (!%p1714_p2)
}
   0xa   :  { %s1718_s8 = scalar_lea.vmem %s23_s12, 8192  ;;  %p1723_p4 = scmp.lt.s32.totalorder %s23_s12, %s23_s12 }
   0xb   :  { %p1719_p3 = scmp.ne.s32.totalorder %s23_s12, %s1718_s8  ;;  %p1724_p5 = scmp.lt.s32.totalorder %s1718_s8, %s1718_s8 }
   0xd   :  { %p1725_p6 = por %p1724_p5, %p1723_p4 }
   0xf   :  { %p1726_p7 = pnand %p1725_p6, %p1719_p3 }
  0x11   :  { %1729 = shalt.err (!%p1726_p7)
}
  0x12   :  { %s1733_s20 = smov 256   ;;  %s1734_s21 = smov 16  }
  0x13   :  { %28 = dma.hbm_to_vmem [thread:$0]  %s2374_s0, 8192, %s23_s12, [#allocation4], %s1733_s20, %s1733_s20, %s1734_s21  }
  0x14   :  { %1730 = dma.done.wait [#allocation4], 8192  }
  0x15   :  { %1731 = vsyncadd [#allocation4], 4294959104  ;;  %v1688_v1 = vld [vmem:[%s2376_s2 + $0x40] sm:$0xff]   ;;  %v1690_v3 = vld [vmem:[%s2376_s2 + $0x48] sm:$0xff]   ;;  %vm275_vm0 = vcmask 1043456   ;;  %vm226_vm1 = vcmask 64512  }
  0x16   :  { %v1689_v2 = vld [vmem:[%s2376_s2] sm:$0xff]   ;;  %1478 = vmatprep.subr.bf16.mxu1 %v1688_v1  ;;  %v1691_v4 = vld [vmem:[%s2376_s2 + $0x8] sm:$0xff]   ;;  %v1692_v5 = vld [vmem:[%s2376_s2 + $0x50] sm:$0xff]   ;;  %vm887_vm4 = vcmask 523264  }
  0x17   :  { %1479 = vmatpush3.bf16.msra.mxu1 %v1689_v2  ;;  %v1693_v6 = vld [vmem:[%s2376_s2 + $0x10] sm:$0xff]   ;;  %v1694_v7 = vld [vmem:[%s2376_s2 + $0x58] sm:$0xff]   ;;  %v1696_v9 = vld [vmem:[%s2376_s2 + $0x60] sm:$0xff]  }
  0x18   :  { %1480 = vmatprep.subr.bf16.mxu1 %v1690_v3  ;;  %v1695_v8 = vld [vmem:[%s2376_s2 + $0x18] sm:$0xff]   ;;  %v1697_v10 = vld [vmem:[%s2376_s2 + $0x20] sm:$0xff]   ;;  %v1698_v11 = vld [vmem:[%s2376_s2 + $0x68] sm:$0xff]  }
  0x19   :  { %v225_v12 = vld [vmem:[%s2377_s3] sm:$0xf]  ;;  %v50_v13 = vld [vmem:[#allocation3 + $0x8] sm:$0xff]  ;;  %v148_v20 = vld [vmem:[%s2375_s1 + $0x18] sm:$0xff] }
  0x1a   :  { %v52_v14 = vld [vmem:[#allocation3 + $0x18] sm:$0xff]  ;;  %1684 = vmatprep.subr.msk.bf16.mxu0 %vm275_vm0, %v225_v12  ;;  %v277_v15 = vsel %vm275_vm0, %v225_v12, 0  ;;  %v146_v18 = vld [vmem:[%s2375_s1 + $0x8] sm:$0xff]  ;;  %v147_v19 = vld [vmem:[%s2375_s1 + $0x10] sm:$0xff] }
  0x1b   :  { %1481 = vmatpush3.bf16.msra.mxu1 %v1691_v4  ;;  %v114_v16 = vpack.c.bf16 %v52_v14, %v50_v13  ;;  %v145_v17 = vld [vmem:[%s2375_s1] sm:$0xff]  ;;  %1611 = vmatpush3.bf16.msra.mxu0 %v277_v15  ;;  %v1699_v21 = vld [vmem:[%s2376_s2 + $0x28] sm:$0xff]   ;;  %v178_v23 = vpack.c.bf16 %v148_v20, %v147_v19  ;;  %v1700_v24 = vld [vmem:[%s2376_s2 + $0x70] sm:$0xff]  }
  0x1c   :  { %1482 = vmatprep.subr.bf16.mxu1 %v1692_v5  ;;  %v177_v22 = vpack.c.bf16 %v146_v18, %v145_v17  ;;  %v149_v25 = vld [vmem:[%s2375_s1 + $0x20] sm:$0xff]  ;;  %v150_v26 = vld [vmem:[%s2375_s1 + $0x28] sm:$0xff]  ;;  %v1701_v27 = vld [vmem:[%s2376_s2 + $0x30] sm:$0xff]  }
  0x1d   :  { %568 = vmatprep.mubr.bf16.mxu1 %v114_v16  ;;  %v179_v28 = vpack.c.bf16 %v150_v26, %v149_v25  ;;  %v151_v29 = vld [vmem:[%s2375_s1 + $0x30] sm:$0xff]  ;;  %v152_v30 = vld [vmem:[%s2375_s1 + $0x38] sm:$0xff]  ;;  %v153_v32 = vld [vmem:[%s2375_s1 + $0x40] sm:$0xff] }
  0x1e   :  { %1612 = vmatprep.mubr.msk.bf16.mxu0 %vm226_vm1, %v177_v22  ;;  %v1702_v31 = vld [vmem:[%s2376_s2 + $0x78] sm:$0xff]   ;;  %v180_v33 = vpack.c.bf16 %v152_v30, %v151_v29  ;;  %v154_v34 = vld [vmem:[%s2375_s1 + $0x48] sm:$0xff]  ;;  %v155_v43 = vld [vmem:[%s2375_s1 + $0x50] sm:$0xff] }
  0x1f   :  { %1483 = vmatpush3.bf16.msra.mxu1 %v1693_v6  ;;  %1613 = vmatmul.mubr.msk.bf16.vlgmr.msra.gmra.mrb[0].mxu0 %vm226_vm1, %v178_v23  ;;  %v1703_v35 = vld [vmem:[%s2376_s2 + $0x38] sm:$0xff]   ;;  %v49_v36 = vld [vmem:[#allocation3] sm:$0xff]  ;;  %v181_v38 = vpack.c.bf16 %v154_v34, %v153_v32  ;;  %v54_v39 = vld [vmem:[#allocation3 + $0x28] sm:$0xff] }
  0x20   :  { %1484 = vmatprep.subr.bf16.mxu1 %v1694_v7  ;;  %1616 = vmatprep.mubr.msk.bf16.mxu0 %vm226_vm1, %v179_v28  ;;  %v51_v37 = vld [vmem:[#allocation3 + $0x10] sm:$0xff]  ;;  %v56_v40 = vld [vmem:[#allocation3 + $0x38] sm:$0xff]  ;;  %v158_v46 = vld [vmem:[%s2375_s1 + $0x68] sm:$0xff] }
  0x21   :  { %v113_v41 = vpack.c.bf16 %v51_v37, %v49_v36  ;;  %v116_v42 = vpack.c.bf16 %v56_v40, %v54_v39  ;;  %v156_v44 = vld [vmem:[%s2375_s1 + $0x58] sm:$0xff]  ;;  %v157_v45 = vld [vmem:[%s2375_s1 + $0x60] sm:$0xff]  ;;  %v58_v51 = vld [vmem:[#allocation3 + $0x48] sm:$0xff] }
  0x22   :  { %v182_v47 = vpack.c.bf16 %v156_v44, %v155_v43  ;;  %v53_v48 = vld [vmem:[#allocation3 + $0x20] sm:$0xff]  ;;  %v55_v49 = vld [vmem:[#allocation3 + $0x30] sm:$0xff]  ;;  %v183_v50 = vpack.c.bf16 %v158_v46, %v157_v45  ;;  %v60_v52 = vld [vmem:[#allocation3 + $0x58] sm:$0xff] }
  0x23   :  { %1485 = vmatpush3.bf16.msra.mxu1 %v1695_v8  ;;  %v115_v53 = vpack.c.bf16 %v55_v49, %v53_v48  ;;  %v118_v54 = vpack.c.bf16 %v60_v52, %v58_v51  ;;  %v159_v55 = vld [vmem:[%s2375_s1 + $0x70] sm:$0xff]  ;;  %v160_v56 = vld [vmem:[%s2375_s1 + $0x78] sm:$0xff]  ;;  %v161_v57 = vld [vmem:[%s2375_s1 + $0x80] sm:$0xff] }
  0x24   :  { %1486 = vmatprep.subr.bf16.mxu1 %v1696_v9  ;;  %v162_v58 = vld [vmem:[%s2375_s1 + $0x88] sm:$0xff]  ;;  %v184_v59 = vpack.c.bf16 %v160_v56, %v159_v55  ;;  %v59_v61 = vld [vmem:[#allocation3 + $0x50] sm:$0xff]  ;;  %v64_v0 = vld [vmem:[#allocation3 + $0x78] sm:$0xff] }
  0x25   :  { %v57_v60 = vld [vmem:[#allocation3 + $0x40] sm:$0xff]  ;;  %v185_v62 = vpack.c.bf16 %v162_v58, %v161_v57  ;;  %v62_v63 = vld [vmem:[#allocation3 + $0x68] sm:$0xff]  ;;  %v164_v4 = vld [vmem:[%s2375_s1 + $0x98] sm:$0xff] }
  0x26   :  { %v117_v1 = vpack.c.bf16 %v59_v61, %v57_v60  ;;  %v120_v2 = vpack.c.bf16 %v64_v0, %v62_v63  ;;  %v163_v3 = vld [vmem:[%s2375_s1 + $0x90] sm:$0xff]  ;;  %v165_v5 = vld [vmem:[%s2375_s1 + $0xa0] sm:$0xff]  ;;  %v166_v6 = vld [vmem:[%s2375_s1 + $0xa8] sm:$0xff] }
  0x27   :  { %1487 = vmatpush3.bf16.msra.mxu1 %v1697_v10  ;;  %1617 = vmatmul.mubr.msk.bf16.gmra.mrb[4].mxu0 %vm226_vm1, %v180_v33  ;;  %v186_v7 = vpack.c.bf16 %v164_v4, %v163_v3  ;;  %v61_v8 = vld [vmem:[#allocation3 + $0x60] sm:$0xff]  ;;  %v63_v9 = vld [vmem:[#allocation3 + $0x70] sm:$0xff]  ;;  %v187_v10 = vpack.c.bf16 %v166_v6, %v165_v5  ;;  %v68_v12 = vld [vmem:[#allocation3 + $0x98] sm:$0xff] }
  0x28   :  { %1488 = vmatprep.subr.bf16.mxu1 %v1698_v11  ;;  %1620 = vmatprep.mubr.msk.bf16.mxu0 %vm226_vm1, %v181_v38  ;;  %v66_v11 = vld [vmem:[#allocation3 + $0x88] sm:$0xff]  ;;  %v119_v13 = vpack.c.bf16 %v63_v9, %v61_v8  ;;  %v168_v16 = vld [vmem:[%s2375_s1 + $0xb8] sm:$0xff]  ;;  %v169_v17 = vld [vmem:[%s2375_s1 + $0xc0] sm:$0xff] }
  0x29   :  { %v122_v14 = vpack.c.bf16 %v68_v12, %v66_v11  ;;  %v167_v15 = vld [vmem:[%s2375_s1 + $0xb0] sm:$0xff]  ;;  %v170_v18 = vld [vmem:[%s2375_s1 + $0xc8] sm:$0xff]  ;;  %v172_v28 = vld [vmem:[%s2375_s1 + $0xd8] sm:$0xff] }
  0x2a   :  { %v188_v19 = vpack.c.bf16 %v168_v16, %v167_v15  ;;  %v65_v20 = vld [vmem:[#allocation3 + $0x80] sm:$0xff]  ;;  %v189_v22 = vpack.c.bf16 %v170_v18, %v169_v17  ;;  %v70_v23 = vld [vmem:[#allocation3 + $0xa8] sm:$0xff]  ;;  %v71_v33 = vld [vmem:[#allocation3 + $0xb0] sm:$0xff] }
  0x2b   :  { %1489 = vmatpush3.bf16.msra.mxu1 %v1699_v21  ;;  %v67_v21 = vld [vmem:[#allocation3 + $0x90] sm:$0xff]  ;;  %v173_v29 = vld [vmem:[%s2375_s1 + $0xe0] sm:$0xff]  ;;  %v174_v30 = vld [vmem:[%s2375_s1 + $0xe8] sm:$0xff] }
  0x2c   :  { %1490 = vmatprep.subr.bf16.mxu1 %v1700_v24  ;;  %v72_v24 = vld [vmem:[#allocation3 + $0xb8] sm:$0xff]  ;;  %v121_v25 = vpack.c.bf16 %v67_v21, %v65_v20  ;;  %v69_v32 = vld [vmem:[#allocation3 + $0xa0] sm:$0xff]  ;;  %v191_v34 = vpack.c.bf16 %v174_v30, %v173_v29  ;;  %v175_v39 = vld [vmem:[%s2375_s1 + $0xf0] sm:$0xff] }
  0x2d   :  { %v124_v26 = vpack.c.bf16 %v72_v24, %v70_v23  ;;  %v76_v36 = vld [vmem:[#allocation3 + $0xd8] sm:$0xff]  ;;  %v123_v37 = vpack.c.bf16 %v71_v33, %v69_v32  ;;  %v75_v43 = vld [vmem:[#allocation3 + $0xd0] sm:$0xff]  ;;  %v78_v44 = vld [vmem:[#allocation3 + $0xe8] sm:$0xff] }
  0x2e   :  { %v176_v40 = vld [vmem:[%s2375_s1 + $0xf8] sm:$0xff]  ;;  %v77_v48 = vld [vmem:[#allocation3 + $0xe0] sm:$0xff]  ;;  %v86_v56 = vld [vmem:[#allocation3 + $0x128] sm:$0xff] }
  0x2f   :  { %1491 = vmatpush3.bf16.msra.mxu1 %v1701_v27  ;;  %1621 = vmatmul.mubr.msk.bf16.gmra.mrb[8].mxu0 %vm226_vm1, %v182_v47  ;;  %v171_v27 = vld [vmem:[%s2375_s1 + $0xd0] sm:$0xff]  ;;  %v80_v45 = vld [vmem:[#allocation3 + $0xf8] sm:$0xff]  ;;  %v85_v60 = vld [vmem:[#allocation3 + $0x120] sm:$0xff] }
  0x30   :  { %1492 = vmatprep.subr.bf16.mxu1 %v1702_v31  ;;  %1624 = vmatprep.mubr.msk.bf16.mxu0 %vm226_vm1, %v183_v50  ;;  %v190_v31 = vpack.c.bf16 %v172_v28, %v171_v27  ;;  %v128_v47 = vpack.c.bf16 %v80_v45, %v78_v44  ;;  %v79_v49 = vld [vmem:[#allocation3 + $0xf0] sm:$0xff]  ;;  %v82_v50 = vld [vmem:[#allocation3 + $0x108] sm:$0xff]  ;;  %v84_v51 = vld [vmem:[#allocation3 + $0x118] sm:$0xff] }
  0x31   :  { %v127_v52 = vpack.c.bf16 %v79_v49, %v77_v48  ;;  %v83_v55 = vld [vmem:[#allocation3 + $0x110] sm:$0xff]  ;;  %v88_v57 = vld [vmem:[#allocation3 + $0x138] sm:$0xff]  ;;  %v94_v4 = vld [vmem:[#allocation3 + $0x168] sm:$0xff] }
  0x32   :  { %v87_v61 = vld [vmem:[#allocation3 + $0x130] sm:$0xff]  ;;  %v92_v63 = vld [vmem:[#allocation3 + $0x158] sm:$0xff]  ;;  %v93_v8 = vld [vmem:[#allocation3 + $0x160] sm:$0xff] }
  0x33   :  { %1493 = vmatpush3.bf16.msra.mxu1 %v1703_v35  ;;  %v74_v35 = vld [vmem:[#allocation3 + $0xc8] sm:$0xff]  ;;  %v131_v0 = vpack.c.bf16 %v87_v61, %v85_v60  ;;  %v91_v3 = vld [vmem:[#allocation3 + $0x150] sm:$0xff]  ;;  %v96_v5 = vld [vmem:[#allocation3 + $0x178] sm:$0xff] }
  0x34   :  { %v126_v38 = vpack.c.bf16 %v76_v36, %v74_v35  ;;  %v95_v9 = vld [vmem:[#allocation3 + $0x170] sm:$0xff]  ;;  %v100_v11 = vld [vmem:[#allocation3 + $0x198] sm:$0xff]  ;;  %v97_v15 = vld [vmem:[#allocation3 + $0x180] sm:$0xff] }
  0x35   :  { %v135_v12 = vpack.c.bf16 %v95_v9, %v93_v8  ;;  %v99_v16 = vld [vmem:[#allocation3 + $0x190] sm:$0xff]  ;;  %v102_v17 = vld [vmem:[#allocation3 + $0x1a8] sm:$0xff]  ;;  %v104_v18 = vld [vmem:[#allocation3 + $0x1b8] sm:$0xff] }
  0x36   :  { %569 = vmatmul.mubr.bf16.vlgmr.msra.gmra.mrb[0].mxu1 %v113_v41  ;;  %v192_v41 = vpack.c.bf16 %v176_v40, %v175_v39  ;;  %v1705_v20 = vld [vmem:[%s2379_s5 + $0x8] sm:$0xff]   ;;  %v140_v21 = vpack.c.bf16 %v104_v18, %v102_v17  ;;  %v103_v24 = vld [vmem:[#allocation3 + $0x1b0] sm:$0xff]  ;;  %v112_v33 = vld [vmem:[#allocation3 + $0x1f8] sm:$0xff] }
  0x37   :  { %576 = vmatprep.mubr.bf16.mxu1 %v116_v42  ;;  %1625 = vmatmul.mubr.msk.bf16.gmra.mrb[12].mxu0 %vm226_vm1, %v184_v59  ;;  %v73_v42 = vld [vmem:[#allocation3 + $0xc0] sm:$0xff]  ;;  %v132_v59 = vpack.c.bf16 %v88_v57, %v86_v56  ;;  %v1707_v28 = vld [vmem:[%s2379_s5 + $0x18] sm:$0xff]   ;;  %v110_v32 = vld [vmem:[#allocation3 + $0x1e8] sm:$0xff] }
  0x38   :  { %1628 = vmatprep.mubr.msk.bf16.mxu0 %vm226_vm1, %v185_v62  ;;  %v125_v46 = vpack.c.bf16 %v75_v43, %v73_v42  ;;  %v90_v62 = vld [vmem:[#allocation3 + $0x148] sm:$0xff]  ;;  %v101_v23 = vld [vmem:[#allocation3 + $0x1a0] sm:$0xff]  ;;  %v144_v35 = vpack.c.bf16 %v112_v33, %v110_v32 }
  0x39   :  { %v139_v27 = vpack.c.bf16 %v103_v24, %v101_v23  ;;  %v105_v30 = vld [vmem:[#allocation3 + $0x1c0] sm:$0xff] }
  0x3a   :  { %v109_v36 = vld [vmem:[#allocation3 + $0x1e0] sm:$0xff] }
  0x3e   :  { %577 = vmatmul.mubr.bf16.gmra.mrb[4].mxu1 %v115_v53  ;;  %v130_v53 = vpack.c.bf16 %v84_v51, %v82_v50  ;;  %v1982_v51 = vld [vmem:[%s2378_s4] ss:$0 sm:$0xff] }
  0x3f   :  { %584 = vmatprep.mubr.bf16.mxu1 %v118_v54  ;;  %1629 = vmatmul.mubr.msk.bf16.gmra.mrb[16].mxu0 %vm226_vm1, %v186_v7  ;;  %v81_v54 = vld [vmem:[#allocation3 + $0x100] sm:$0xff]  ;;  %v136_v7 = vpack.c.bf16 %v96_v5, %v94_v4 }
  0x40   :  { %1632 = vmatprep.mubr.msk.bf16.mxu0 %vm226_vm1, %v187_v10  ;;  %v129_v58 = vpack.c.bf16 %v83_v55, %v81_v54  ;;  %v98_v10 = vld [vmem:[#allocation3 + $0x188] sm:$0xff] }
  0x46   :  { %585 = vmatmul.mubr.bf16.gmra.mrb[8].mxu1 %v117_v1  ;;  %v134_v1 = vpack.c.bf16 %v92_v63, %v90_v62 }
  0x47   :  { %592 = vmatprep.mubr.bf16.mxu1 %v120_v2  ;;  %1633 = vmatmul.mubr.msk.bf16.gmra.mrb[20].mxu0 %vm226_vm1, %v188_v19  ;;  %v89_v2 = vld [vmem:[#allocation3 + $0x140] sm:$0xff]  ;;  %v137_v19 = vpack.c.bf16 %v99_v16, %v97_v15 }
  0x48   :  { %1636 = vmatprep.mubr.msk.bf16.mxu0 %vm226_vm1, %v189_v22  ;;  %v133_v6 = vpack.c.bf16 %v91_v3, %v89_v2  ;;  %v1706_v22 = vld [vmem:[%s2379_s5 + $0x10] sm:$0xff]  }
  0x4e   :  { %593 = vmatmul.mubr.bf16.gmra.mrb[12].mxu1 %v119_v13  ;;  %v138_v13 = vpack.c.bf16 %v100_v11, %v98_v10 }
  0x4f   :  { %600 = vmatprep.mubr.bf16.mxu1 %v122_v14  ;;  %1637 = vmatmul.mubr.msk.bf16.gmra.mrb[24].mxu0 %vm226_vm1, %v190_v31  ;;  %v1704_v14 = vld [vmem:[%s2379_s5] sm:$0xff]   ;;  %v107_v31 = vld [vmem:[#allocation3 + $0x1d0] sm:$0xff] }
  0x50   :  { %1640 = vmatprep.mubr.msk.bf16.mxu0 %vm226_vm1, %v191_v34  ;;  %1644 = vmatprep.subr.bf16.mxu0 %v1704_v14  ;;  %v141_v34 = vpack.c.bf16 %v107_v31, %v105_v30 }
  0x51   :  { %1645 = vmatpush3.bf16.msra.mxu0 %v1704_v14 }
  0x52   :  { %1646 = vmatprep.subr.bf16.mxu0 %v1705_v20 }
  0x55   :  { %1647 = vmatpush3.bf16.msra.mxu0 %v1705_v20 }
  0x56   :  { %601 = vmatmul.mubr.bf16.gmra.mrb[16].mxu1 %v121_v25  ;;  %v106_v25 = vld [vmem:[#allocation3 + $0x1c8] sm:$0xff]  ;;  %1648 = vmatprep.subr.bf16.mxu0 %v1706_v22 }
  0x57   :  { %608 = vmatprep.mubr.bf16.mxu1 %v124_v26  ;;  %1641 = vmatmul.mubr.msk.bf16.gmra.mrb[28].mxu0 %vm226_vm1, %v192_v41  ;;  %v108_v26 = vld [vmem:[#allocation3 + $0x1d8] sm:$0xff] }
  0x58   :  { %v142_v29 = vpack.c.bf16 %v108_v26, %v106_v25 }
  0x59   :  { %1649 = vmatpush3.bf16.msra.mxu0 %v1706_v22 }
  0x5a   :  { %1650 = vmatprep.subr.bf16.mxu0 %v1707_v28 }
  0x5d   :  { %1651 = vmatpush3.bf16.msra.mxu0 %v1707_v28 }
  0x5e   :  { %609 = vmatmul.mubr.bf16.gmra.mrb[20].mxu1 %v123_v37  ;;  %v111_v37 = vld [vmem:[#allocation3 + $0x1f0] sm:$0xff] }
  0x5f   :  { %616 = vmatprep.mubr.bf16.mxu1 %v126_v38  ;;  %v143_v38 = vpack.c.bf16 %v111_v37, %v109_v36 }
  0x66   :  { %617 = vmatmul.mubr.bf16.gmra.mrb[24].mxu1 %v125_v46 }
  0x67   :  { %624 = vmatprep.mubr.bf16.mxu1 %v128_v47 }
  0x6e   :  { %625 = vmatmul.mubr.bf16.gmra.mrb[28].mxu1 %v127_v52 }
  0x6f   :  { %632 = vmatprep.mubr.bf16.mxu1 %v130_v53 }
  0x76   :  { %633 = vmatmul.mubr.bf16.gmra.mrb[32].mxu1 %v129_v58 }
  0x77   :  { %640 = vmatprep.mubr.bf16.mxu1 %v132_v59 }
  0x7e   :  { %641 = vmatmul.mubr.bf16.gmra.mrb[36].mxu1 %v131_v0 }
  0x7f   :  { %648 = vmatprep.mubr.bf16.mxu1 %v134_v1 }
  0x86   :  { %649 = vmatmul.mubr.bf16.gmra.mrb[40].mxu1 %v133_v6 }
  0x87   :  { %656 = vmatprep.mubr.bf16.mxu1 %v136_v7 }
  0x8e   :  { %657 = vmatmul.mubr.bf16.gmra.mrb[44].mxu1 %v135_v12 }
  0x8f   :  { %664 = vmatprep.mubr.bf16.mxu1 %v138_v13 }
  0x96   :  { %665 = vmatmul.mubr.bf16.gmra.mrb[48].mxu1 %v137_v19 }
  0x97   :  { %672 = vmatprep.mubr.bf16.mxu1 %v140_v21 }
  0x9e   :  { %673 = vmatmul.mubr.bf16.gmra.mrb[52].mxu1 %v139_v27 }
  0x9f   :  { %680 = vmatprep.mubr.bf16.mxu1 %v142_v29 }
  0xa6   :  { %681 = vmatmul.mubr.bf16.gmra.mrb[56].mxu1 %v141_v34 }
  0xa7   :  { %688 = vmatprep.mubr.bf16.mxu1 %v144_v35 }
  0xae   :  { %689 = vmatmul.mubr.bf16.gmra.mrb[60].mxu1 %v143_v38 }
  0xf2   :  { %v1614_v39 = vpop.f32.mrb[0].mxu0 }
  0xf3   :  { %v313_v40 = vpop.f32.mrb[1].mxu0 }
  0xf4   :  { %v1615_v41 = vpop.f32.mrb[2].mxu0 }
  0xf5   :  { %v316_v42 = vpop.f32.mrb[3].mxu0 }
  0xfa   :  { %v1975_v43 = vpop.f32.mrb[4].mxu0 }
  0xfb   :  { %v329_v44 = vpop.f32.mrb[5].mxu0 }
  0xfc   :  { %v1977_v45 = vpop.f32.mrb[6].mxu0 }
  0xfd   :  { %v332_v46 = vpop.f32.mrb[7].mxu0 }
 0x102   :  { %v1984_v55 = vpop.f32.mrb[8].mxu0 }
 0x103   :  { %v1986_v56 = vpop.f32.mrb[9].mxu0 }
 0x104   :  { %v1989_v59 = vpop.f32.mrb[10].mxu0 }
 0x105   :  { %v1991_v60 = vpop.f32.mrb[11].mxu0 }
 0x109   :  { %v1494_v47 = vpop.f32.mrb[0].mxu1 }
 0x10a   :  { %v1495_v48 = vpop.f32.mrb[1].mxu1  ;;  %v1994_v9 = vpop.f32.mrb[12].mxu0 }
 0x10b   :  { %v1496_v49 = vadd.f32 %v1495_v48, %v1494_v47  ;;  %v1497_v50 = vpop.f32.mrb[2].mxu1  ;;  %v1996_v11 = vpop.f32.mrb[13].mxu0 }
 0x10c   :  { %v1498_v52 = vpop.f32.mrb[3].mxu1  ;;  %v1999_v14 = vpop.f32.mrb[14].mxu0 }
 0x10d   :  { %v571_v53 = vadd.f32 %v1496_v49, %v313_v40  ;;  %v1499_v54 = vadd.f32 %v1498_v52, %v1497_v50  ;;  %v2002_v15 = vpop.f32.mrb[15].mxu0 }
 0x10f   :  { %v704_v57 = vadd.f32 %v1982_v51, %v571_v53  ;;  %v574_v58 = vadd.f32 %v1499_v54, %v316_v42 }
 0x111   :  { %v768_v61 = vmul.f32 0.01, %v704_v57  ;;  %v705_v62 = vadd.f32 %v1982_v51, %v574_v58  ;;  %v1500_v63 = vpop.f32.mrb[4].mxu1  ;;  %vm736_vm2 = vcmp.gt.f32.partialorder %v704_v57, 0.0 }
 0x112   :  { %v1501_v0 = vpop.f32.mrb[5].mxu1  ;;  %v2005_v28 = vpop.f32.mrb[16].mxu0 }
 0x113   :  { %vm737_vm3 = vcmp.gt.f32.partialorder %v705_v62, 0.0  ;;  %v769_v1 = vmul.f32 0.01, %v705_v62  ;;  %v1502_v2 = vadd.f32 %v1501_v0, %v1500_v63  ;;  %v1503_v3 = vpop.f32.mrb[6].mxu1  ;;  %v800_v5 = vsel %vm736_vm2, %v704_v57, %v768_v61  ;;  %v2007_v30 = vpop.f32.mrb[17].mxu0 }
 0x114   :  { %v1504_v4 = vpop.f32.mrb[7].mxu1  ;;  %v2010_v33 = vpop.f32.mrb[18].mxu0 }
 0x115   :  { %v801_v6 = vsel %vm737_vm3, %v705_v62, %v769_v1  ;;  %v579_v7 = vadd.f32 %v1614_v39, %v1502_v2  ;;  %v1505_v8 = vadd.f32 %v1504_v4, %v1503_v3  ;;  %v2013_v34 = vpop.f32.mrb[19].mxu0 }
 0x116   :  { %v832_v10 = vpack.c.bf16 %v801_v6, %v800_v5 }
 0x117   :  { %v706_v12 = vadd.f32 %v1982_v51, %v579_v7  ;;  %v582_v13 = vadd.f32 %v1615_v41, %v1505_v8 }
 0x118   :  { %1652 = vmatprep.mubr.msk.bf16.mxu0 %vm887_vm4, %v832_v10 }
 0x119   :  { %v770_v16 = vmul.f32 0.01, %v706_v12  ;;  %v707_v17 = vadd.f32 %v1982_v51, %v582_v13  ;;  %v1506_v18 = vpop.f32.mrb[8].mxu1  ;;  %vm738_vm5 = vcmp.gt.f32.partialorder %v706_v12, 0.0 }
 0x11a   :  { %v1507_v19 = vpop.f32.mrb[9].mxu1  ;;  %v2017_v49 = vpop.f32.mrb[20].mxu0 }
 0x11b   :  { %vm739_vm6 = vcmp.gt.f32.partialorder %v707_v17, 0.0  ;;  %v771_v20 = vmul.f32 0.01, %v707_v17  ;;  %v1508_v21 = vadd.f32 %v1507_v19, %v1506_v18  ;;  %v1509_v22 = vpop.f32.mrb[10].mxu1  ;;  %v802_v24 = vsel %vm738_vm5, %v706_v12, %v770_v16  ;;  %v2019_v52 = vpop.f32.mrb[21].mxu0 }
 0x11c   :  { %v1510_v23 = vpop.f32.mrb[11].mxu1  ;;  %v2023_v57 = vpop.f32.mrb[22].mxu0 }
 0x11d   :  { %v803_v25 = vsel %vm739_vm6, %v707_v17, %v771_v20  ;;  %v587_v26 = vadd.f32 %v1508_v21, %v329_v44  ;;  %v1511_v27 = vadd.f32 %v1510_v23, %v1509_v22  ;;  %v2026_v58 = vpop.f32.mrb[23].mxu0 }
 0x11e   :  { %v833_v29 = vpack.c.bf16 %v803_v25, %v802_v24 }
 0x11f   :  { %v708_v31 = vadd.f32 %v1982_v51, %v587_v26  ;;  %v590_v32 = vadd.f32 %v1511_v27, %v332_v46 }
 0x120   :  { %1653 = vmatmul.mubr.msk.bf16.vlgmr.msra.gmra.mrb[32].mxu0 %vm887_vm4, %v833_v29 }
 0x121   :  { %v772_v35 = vmul.f32 0.01, %v708_v31  ;;  %v709_v36 = vadd.f32 %v1982_v51, %v590_v32  ;;  %v1512_v37 = vpop.f32.mrb[12].mxu1  ;;  %vm740_vm7 = vcmp.gt.f32.partialorder %v708_v31, 0.0 }
 0x122   :  { %v1513_v38 = vpop.f32.mrb[13].mxu1  ;;  %v2030_v7 = vpop.f32.mrb[24].mxu0 }
 0x123   :  { %vm741_vm8 = vcmp.gt.f32.partialorder %v709_v36, 0.0  ;;  %v773_v39 = vmul.f32 0.01, %v709_v36  ;;  %v1514_v40 = vadd.f32 %v1513_v38, %v1512_v37  ;;  %v1515_v41 = vpop.f32.mrb[14].mxu1  ;;  %v804_v44 = vsel %vm740_vm7, %v708_v31, %v772_v35  ;;  %v2032_v10 = vpop.f32.mrb[25].mxu0 }
 0x124   :  { %v1516_v42 = vpop.f32.mrb[15].mxu1  ;;  %v2036_v16 = vpop.f32.mrb[26].mxu0 }
 0x125   :  { %v805_v47 = vsel %vm741_vm8, %v709_v36, %v773_v39  ;;  %v595_v46 = vadd.f32 %v1975_v43, %v1514_v40  ;;  %v1517_v48 = vadd.f32 %v1516_v42, %v1515_v41  ;;  %v2039_v17 = vpop.f32.mrb[27].mxu0 }
 0x126   :  { %v834_v50 = vpack.c.bf16 %v805_v47, %v804_v44 }
 0x127   :  { %v710_v53 = vadd.f32 %v1982_v51, %v595_v46  ;;  %v598_v54 = vadd.f32 %v1977_v45, %v1517_v48 }
 0x128   :  { %1656 = vmatprep.mubr.msk.bf16.mxu0 %vm887_vm4, %v834_v50 }
 0x129   :  { %v774_v61 = vmul.f32 0.01, %v710_v53  ;;  %v711_v62 = vadd.f32 %v1982_v51, %v598_v54  ;;  %v1518_v43 = vpop.f32.mrb[16].mxu1  ;;  %vm742_vm9 = vcmp.gt.f32.partialorder %v710_v53, 0.0 }
 0x12a   :  { %v1519_v63 = vpop.f32.mrb[17].mxu1  ;;  %v2043_v29 = vpop.f32.mrb[28].mxu0 }
 0x12b   :  { %vm743_vm10 = vcmp.gt.f32.partialorder %v711_v62, 0.0  ;;  %v775_v0 = vmul.f32 0.01, %v711_v62  ;;  %v1520_v1 = vadd.f32 %v1519_v63, %v1518_v43  ;;  %v1521_v2 = vpop.f32.mrb[18].mxu1  ;;  %v806_v5 = vsel %vm742_vm9, %v710_v53, %v774_v61  ;;  %v2045_v32 = vpop.f32.mrb[29].mxu0 }
 0x12c   :  { %v1522_v3 = vpop.f32.mrb[19].mxu1  ;;  %v2049_v37 = vpop.f32.mrb[30].mxu0 }
 0x12d   :  { %v603_v4 = vadd.f32 %v1520_v1, %v1986_v56  ;;  %v1523_v45 = vadd.f32 %v1522_v3, %v1521_v2  ;;  %v807_v6 = vsel %vm743_vm10, %v711_v62, %v775_v0  ;;  %v2052_v38 = vpop.f32.mrb[31].mxu0 }
 0x12e   :  { %v835_v8 = vpack.c.bf16 %v807_v6, %v806_v5 }
 0x12f   :  { %v712_v12 = vadd.f32 %v1982_v51, %v603_v4  ;;  %v606_v13 = vadd.f32 %v1523_v45, %v1991_v60 }
 0x130   :  { %1657 = vmatmul.mubr.msk.bf16.gmra.mrb[36].mxu0 %vm887_vm4, %v835_v8 }
 0x131   :  { %v776_v18 = vmul.f32 0.01, %v712_v12  ;;  %v713_v56 = vadd.f32 %v1982_v51, %v606_v13  ;;  %v1524_v19 = vpop.f32.mrb[20].mxu1  ;;  %vm744_vm11 = vcmp.gt.f32.partialorder %v712_v12, 0.0 }
 0x132   :  { %v1525_v20 = vpop.f32.mrb[21].mxu1 }
 0x133   :  { %vm745_vm12 = vcmp.gt.f32.partialorder %v713_v56, 0.0  ;;  %v777_v21 = vmul.f32 0.01, %v713_v56  ;;  %v1526_v22 = vadd.f32 %v1525_v20, %v1524_v19  ;;  %v1527_v23 = vpop.f32.mrb[22].mxu1  ;;  %v808_v25 = vsel %vm744_vm11, %v712_v12, %v776_v18 }
 0x134   :  { %v1528_v24 = vpop.f32.mrb[23].mxu1 }
 0x135   :  { %v809_v26 = vsel %vm745_vm12, %v713_v56, %v777_v21  ;;  %v611_v60 = vadd.f32 %v1984_v55, %v1526_v22  ;;  %v1529_v27 = vadd.f32 %v1528_v24, %v1527_v23 }
 0x136   :  { %v836_v31 = vpack.c.bf16 %v809_v26, %v808_v25 }
 0x137   :  { %v714_v35 = vadd.f32 %v1982_v51, %v611_v60  ;;  %v614_v36 = vadd.f32 %v1989_v59, %v1529_v27 }
 0x138   :  { %1660 = vmatprep.mubr.msk.bf16.mxu0 %vm887_vm4, %v836_v31 }
 0x139   :  { %v778_v39 = vmul.f32 0.01, %v714_v35  ;;  %v715_v40 = vadd.f32 %v1982_v51, %v614_v36  ;;  %v1530_v55 = vpop.f32.mrb[24].mxu1  ;;  %vm746_vm13 = vcmp.gt.f32.partialorder %v714_v35, 0.0 }
 0x13a   :  { %v1531_v41 = vpop.f32.mrb[25].mxu1 }
 0x13b   :  { %vm747_vm14 = vcmp.gt.f32.partialorder %v715_v40, 0.0  ;;  %v779_v42 = vmul.f32 0.01, %v715_v40  ;;  %v1532_v44 = vadd.f32 %v1531_v41, %v1530_v55  ;;  %v1533_v47 = vpop.f32.mrb[26].mxu1  ;;  %v810_v50 = vsel %vm746_vm13, %v714_v35, %v778_v39 }
 0x13c   :  { %v1534_v46 = vpop.f32.mrb[27].mxu1 }
 0x13d   :  { %v619_v48 = vadd.f32 %v1532_v44, %v1996_v11  ;;  %v1535_v59 = vadd.f32 %v1534_v46, %v1533_v47  ;;  %v811_v53 = vsel %vm747_vm14, %v715_v40, %v779_v42 }
 0x13e   :  { %v837_v54 = vpack.c.bf16 %v811_v53, %v810_v50 }
 0x13f   :  { %v716_v61 = vadd.f32 %v1982_v51, %v619_v48  ;;  %v622_v62 = vadd.f32 %v1535_v59, %v2002_v15 }
 0x140   :  { %1661 = vmatmul.mubr.msk.bf16.gmra.mrb[40].mxu0 %vm887_vm4, %v837_v54 }
 0x141   :  { %v780_v43 = vmul.f32 0.01, %v716_v61  ;;  %v717_v63 = vadd.f32 %v1982_v51, %v622_v62  ;;  %v1536_v0 = vpop.f32.mrb[28].mxu1  ;;  %vm748_vm15 = vcmp.gt.f32.partialorder %v716_v61, 0.0 }
 0x142   :  { %v1537_v1 = vpop.f32.mrb[29].mxu1 }
 0x143   :  { %vm749_vm0 = vcmp.gt.f32.partialorder %v717_v63, 0.0  ;;  %v781_v2 = vmul.f32 0.01, %v717_v63  ;;  %v1538_v3 = vadd.f32 %v1537_v1, %v1536_v0  ;;  %v1539_v11 = vpop.f32.mrb[30].mxu1  ;;  %v812_v45 = vsel %vm748_vm15, %v716_v61, %v780_v43 }
 0x144   :  { %v1540_v4 = vpop.f32.mrb[31].mxu1 }
 0x145   :  { %v813_v5 = vsel %vm749_vm0, %v717_v63, %v781_v2  ;;  %v627_v6 = vadd.f32 %v1994_v9, %v1538_v3  ;;  %v1541_v8 = vadd.f32 %v1540_v4, %v1539_v11 }
 0x146   :  { %v838_v12 = vpack.c.bf16 %v813_v5, %v812_v45 }
 0x147   :  { %v718_v15 = vadd.f32 %v1982_v51, %v627_v6  ;;  %v630_v13 = vadd.f32 %v1999_v14, %v1541_v8 }
 0x148   :  { %1664 = vmatprep.mubr.msk.bf16.mxu0 %vm887_vm4, %v838_v12 }
 0x149   :  { %v782_v18 = vmul.f32 0.01, %v718_v15  ;;  %v719_v56 = vadd.f32 %v1982_v51, %v630_v13  ;;  %v1542_v19 = vpop.f32.mrb[32].mxu1  ;;  %vm750_vm1 = vcmp.gt.f32.partialorder %v718_v15, 0.0 }
 0x14a   :  { %v1543_v20 = vpop.f32.mrb[33].mxu1 }
 0x14b   :  { %vm751_vm2 = vcmp.gt.f32.partialorder %v719_v56, 0.0  ;;  %v783_v21 = vmul.f32 0.01, %v719_v56  ;;  %v1544_v22 = vadd.f32 %v1543_v20, %v1542_v19  ;;  %v1545_v23 = vpop.f32.mrb[34].mxu1  ;;  %v814_v26 = vsel %vm750_vm1, %v718_v15, %v782_v18 }
 0x14c   :  { %v1546_v24 = vpop.f32.mrb[35].mxu1 }
 0x14d   :  { %v635_v9 = vadd.f32 %v1544_v22, %v2007_v30  ;;  %v1547_v25 = vadd.f32 %v1546_v24, %v1545_v23  ;;  %v815_v60 = vsel %vm751_vm2, %v719_v56, %v783_v21 }
 0x14e   :  { %v839_v27 = vpack.c.bf16 %v815_v60, %v814_v26 }
 0x14f   :  { %v720_v14 = vadd.f32 %v1982_v51, %v635_v9  ;;  %v638_v31 = vadd.f32 %v1547_v25, %v2013_v34 }
 0x150   :  { %1665 = vmatmul.mubr.msk.bf16.gmra.mrb[44].mxu0 %vm887_vm4, %v839_v27 }
 0x151   :  { %v784_v35 = vmul.f32 0.01, %v720_v14  ;;  %v721_v36 = vadd.f32 %v1982_v51, %v638_v31  ;;  %v1548_v39 = vpop.f32.mrb[36].mxu1  ;;  %vm752_vm3 = vcmp.gt.f32.partialorder %v720_v14, 0.0 }
 0x152   :  { %v1549_v40 = vpop.f32.mrb[37].mxu1 }
 0x153   :  { %vm753_vm5 = vcmp.gt.f32.partialorder %v721_v36, 0.0  ;;  %v785_v55 = vmul.f32 0.01, %v721_v36  ;;  %v1550_v41 = vadd.f32 %v1549_v40, %v1548_v39  ;;  %v1551_v30 = vpop.f32.mrb[38].mxu1  ;;  %v816_v44 = vsel %vm752_vm3, %v720_v14, %v784_v35 }
 0x154   :  { %v1552_v42 = vpop.f32.mrb[39].mxu1 }
 0x155   :  { %v817_v47 = vsel %vm753_vm5, %v721_v36, %v785_v55  ;;  %v643_v46 = vadd.f32 %v2005_v28, %v1550_v41  ;;  %v1553_v48 = vadd.f32 %v1552_v42, %v1551_v30 }
 0x156   :  { %v840_v59 = vpack.c.bf16 %v817_v47, %v816_v44 }
 0x157   :  { %v722_v34 = vadd.f32 %v1982_v51, %v643_v46  ;;  %v646_v50 = vadd.f32 %v2010_v33, %v1553_v48 }
 0x158   :  { %1668 = vmatprep.mubr.msk.bf16.mxu0 %vm887_vm4, %v840_v59 }
 0x159   :  { %v786_v53 = vmul.f32 0.01, %v722_v34  ;;  %v723_v54 = vadd.f32 %v1982_v51, %v646_v50  ;;  %v1554_v61 = vpop.f32.mrb[40].mxu1  ;;  %vm754_vm6 = vcmp.gt.f32.partialorder %v722_v34, 0.0 }
 0x15a   :  { %v1555_v62 = vpop.f32.mrb[41].mxu1 }
 0x15b   :  { %vm755_vm7 = vcmp.gt.f32.partialorder %v723_v54, 0.0  ;;  %v787_v43 = vmul.f32 0.01, %v723_v54  ;;  %v1556_v63 = vadd.f32 %v1555_v62, %v1554_v61  ;;  %v1557_v0 = vpop.f32.mrb[42].mxu1  ;;  %v818_v3 = vsel %vm754_vm6, %v722_v34, %v786_v53 }
 0x15c   :  { %v1558_v1 = vpop.f32.mrb[43].mxu1 }
 0x15d   :  { %v651_v28 = vadd.f32 %v1556_v63, %v2019_v52  ;;  %v1559_v2 = vadd.f32 %v1558_v1, %v1557_v0  ;;  %v819_v11 = vsel %vm755_vm7, %v723_v54, %v787_v43 }
 0x15e   :  { %v841_v4 = vpack.c.bf16 %v819_v11, %v818_v3 }
 0x15f   :  { %v724_v33 = vadd.f32 %v1982_v51, %v651_v28  ;;  %v654_v45 = vadd.f32 %v1559_v2, %v2026_v58 }
 0x160   :  { %1669 = vmatmul.mubr.msk.bf16.gmra.mrb[48].mxu0 %vm887_vm4, %v841_v4 }
 0x161   :  { %v788_v5 = vmul.f32 0.01, %v724_v33  ;;  %v725_v6 = vadd.f32 %v1982_v51, %v654_v45  ;;  %v1560_v8 = vpop.f32.mrb[44].mxu1  ;;  %vm756_vm8 = vcmp.gt.f32.partialorder %v724_v33, 0.0 }
 0x162   :  { %v1561_v12 = vpop.f32.mrb[45].mxu1 }
 0x163   :  { %vm757_vm9 = vcmp.gt.f32.partialorder %v725_v6, 0.0  ;;  %v789_v15 = vmul.f32 0.01, %v725_v6  ;;  %v1562_v13 = vadd.f32 %v1561_v12, %v1560_v8  ;;  %v1563_v52 = vpop.f32.mrb[46].mxu1  ;;  %v820_v56 = vsel %vm756_vm8, %v724_v33, %v788_v5 }
 0x164   :  { %v1564_v18 = vpop.f32.mrb[47].mxu1 }
 0x165   :  { %v821_v19 = vsel %vm757_vm9, %v725_v6, %v789_v15  ;;  %v659_v20 = vadd.f32 %v2017_v49, %v1562_v13  ;;  %v1565_v21 = vadd.f32 %v1564_v18, %v1563_v52 }
 0x166   :  { %v842_v22 = vpack.c.bf16 %v821_v19, %v820_v56 }
 0x167   :  { %v726_v58 = vadd.f32 %v1982_v51, %v659_v20  ;;  %v662_v23 = vadd.f32 %v2023_v57, %v1565_v21 }
 0x168   :  { %1672 = vmatprep.mubr.msk.bf16.mxu0 %vm887_vm4, %v842_v22 }
 0x169   :  { %v790_v24 = vmul.f32 0.01, %v726_v58  ;;  %v727_v9 = vadd.f32 %v1982_v51, %v662_v23  ;;  %v1566_v25 = vpop.f32.mrb[48].mxu1  ;;  %vm758_vm10 = vcmp.gt.f32.partialorder %v726_v58, 0.0 }
 0x16a   :  { %v1567_v26 = vpop.f32.mrb[49].mxu1 }
 0x16b   :  { %vm759_vm11 = vcmp.gt.f32.partialorder %v727_v9, 0.0  ;;  %v791_v60 = vmul.f32 0.01, %v727_v9  ;;  %v1568_v27 = vadd.f32 %v1567_v26, %v1566_v25  ;;  %v1569_v14 = vpop.f32.mrb[50].mxu1  ;;  %v822_v36 = vsel %vm758_vm10, %v726_v58, %v790_v24 }
 0x16c   :  { %v1570_v31 = vpop.f32.mrb[51].mxu1 }
 0x16d   :  { %v667_v49 = vadd.f32 %v1568_v27, %v2032_v10  ;;  %v1571_v35 = vadd.f32 %v1570_v31, %v1569_v14  ;;  %v823_v39 = vsel %vm759_vm11, %v727_v9, %v791_v60 }
 0x16e   :  { %v843_v40 = vpack.c.bf16 %v823_v39, %v822_v36  ;;  %v2117_v39 = vld [vmem:[%s2381_s7] ss:$0 sm:$0xff] }
 0x16f   :  { %v728_v57 = vadd.f32 %v1982_v51, %v667_v49  ;;  %v670_v55 = vadd.f32 %v1571_v35, %v2039_v17 }
 0x170   :  { %1673 = vmatmul.mubr.msk.bf16.gmra.mrb[52].mxu0 %vm887_vm4, %v843_v40 }
 0x171   :  { %v792_v41 = vmul.f32 0.01, %v728_v57  ;;  %v729_v30 = vadd.f32 %v1982_v51, %v670_v55  ;;  %v1572_v42 = vpop.f32.mrb[52].mxu1  ;;  %vm760_vm12 = vcmp.gt.f32.partialorder %v728_v57, 0.0 }
 0x172   :  { %v1573_v44 = vpop.f32.mrb[53].mxu1 }
 0x173   :  { %vm761_vm13 = vcmp.gt.f32.partialorder %v729_v30, 0.0  ;;  %v793_v47 = vmul.f32 0.01, %v729_v30  ;;  %v1574_v46 = vadd.f32 %v1573_v44, %v1572_v42  ;;  %v1575_v10 = vpop.f32.mrb[54].mxu1  ;;  %v824_v59 = vsel %vm760_vm12, %v728_v57, %v792_v41 }
 0x174   :  { %v1576_v48 = vpop.f32.mrb[55].mxu1 }
 0x175   :  { %v825_v34 = vsel %vm761_vm13, %v729_v30, %v793_v47  ;;  %v675_v50 = vadd.f32 %v2030_v7, %v1574_v46  ;;  %v1577_v53 = vadd.f32 %v1576_v48, %v1575_v10 }
 0x176   :  { %v844_v54 = vpack.c.bf16 %v825_v34, %v824_v59 }
 0x177   :  { %v730_v17 = vadd.f32 %v1982_v51, %v675_v50  ;;  %v678_v61 = vadd.f32 %v2036_v16, %v1577_v53 }
 0x178   :  { %1676 = vmatprep.mubr.msk.bf16.mxu0 %vm887_vm4, %v844_v54 }
 0x179   :  { %v794_v62 = vmul.f32 0.01, %v730_v17  ;;  %v731_v43 = vadd.f32 %v1982_v51, %v678_v61  ;;  %v1578_v63 = vpop.f32.mrb[56].mxu1  ;;  %vm762_vm14 = vcmp.gt.f32.partialorder %v730_v17, 0.0 }
 0x17a   :  { %v1579_v0 = vpop.f32.mrb[57].mxu1 }
 0x17b   :  { %vm763_vm15 = vcmp.gt.f32.partialorder %v731_v43, 0.0  ;;  %v795_v1 = vmul.f32 0.01, %v731_v43  ;;  %v1580_v28 = vadd.f32 %v1579_v0, %v1578_v63  ;;  %v1581_v2 = vpop.f32.mrb[58].mxu1  ;;  %v826_v4 = vsel %vm762_vm14, %v730_v17, %v794_v62 }
 0x17c   :  { %v1582_v3 = vpop.f32.mrb[59].mxu1 }
 0x17d   :  { %v683_v7 = vadd.f32 %v1580_v28, %v2045_v32  ;;  %v1583_v11 = vadd.f32 %v1582_v3, %v1581_v2  ;;  %v827_v33 = vsel %vm763_vm15, %v731_v43, %v795_v1 }
 0x17e   :  { %v845_v45 = vpack.c.bf16 %v827_v33, %v826_v4 }
 0x17f   :  { %v732_v16 = vadd.f32 %v1982_v51, %v683_v7  ;;  %v686_v5 = vadd.f32 %v1583_v11, %v2052_v38 }
 0x180   :  { %1677 = vmatmul.mubr.msk.bf16.gmra.mrb[56].mxu0 %vm887_vm4, %v845_v45 }
 0x181   :  { %v796_v6 = vmul.f32 0.01, %v732_v16  ;;  %v733_v8 = vadd.f32 %v1982_v51, %v686_v5  ;;  %v1584_v12 = vpop.f32.mrb[60].mxu1  ;;  %vm764_vm0 = vcmp.gt.f32.partialorder %v732_v16, 0.0 }
 0x182   :  { %v1585_v15 = vpop.f32.mrb[61].mxu1 }
 0x183   :  { %vm765_vm1 = vcmp.gt.f32.partialorder %v733_v8, 0.0  ;;  %v797_v13 = vmul.f32 0.01, %v733_v8  ;;  %v1586_v52 = vadd.f32 %v1585_v15, %v1584_v12  ;;  %v1587_v32 = vpop.f32.mrb[62].mxu1  ;;  %v828_v56 = vsel %vm764_vm0, %v732_v16, %v796_v6 }
 0x184   :  { %v1588_v18 = vpop.f32.mrb[63].mxu1 }
 0x185   :  { %v829_v19 = vsel %vm765_vm1, %v733_v8, %v797_v13  ;;  %v691_v20 = vadd.f32 %v2043_v29, %v1586_v52  ;;  %v1589_v21 = vadd.f32 %v1588_v18, %v1587_v32  ;;  %v2109_v29 = vld [vmem:[%s2380_s6] ss:$0 sm:$0xff] }
 0x186   :  { %v846_v22 = vpack.c.bf16 %v829_v19, %v828_v56 }
 0x187   :  { %v734_v38 = vadd.f32 %v1982_v51, %v691_v20  ;;  %v694_v58 = vadd.f32 %v2049_v37, %v1589_v21 }
 0x188   :  { %1680 = vmatprep.mubr.msk.bf16.mxu0 %vm887_vm4, %v846_v22 }
 0x189   :  { %v798_v23 = vmul.f32 0.01, %v734_v38  ;;  %v735_v24 = vadd.f32 %v1982_v51, %v694_v58  ;;  %vm766_vm2 = vcmp.gt.f32.partialorder %v734_v38, 0.0 }
 0x18b   :  { %vm767_vm3 = vcmp.gt.f32.partialorder %v735_v24, 0.0  ;;  %v799_v9 = vmul.f32 0.01, %v735_v24  ;;  %v830_v25 = vsel %vm766_vm2, %v734_v38, %v798_v23 }
 0x18d   :  { %v831_v26 = vsel %vm767_vm3, %v735_v24, %v799_v9 }
 0x18e   :  { %v847_v60 = vpack.c.bf16 %v831_v26, %v830_v25 }
 0x190   :  { %1681 = vmatmul.mubr.msk.bf16.gmra.mrb[60].mxu0 %vm887_vm4, %v847_v60 }
 0x1f3   :  { %v1654_v27 = vpop.f32.mrb[32].mxu0 }
 0x1f4   :  { %v979_v37 = vadd.f32 %v1654_v27, %v2109_v29  ;;  %v970_v14 = vpop.f32.mrb[33].mxu0 }
 0x1f5   :  { %v971_v31 = vadd.f32 %v2109_v29, %v970_v14  ;;  %v1655_v51 = vpop.f32.mrb[34].mxu0 }
 0x1f6   :  { %v1131_v49 = vmul.f32 0.01, %v979_v37  ;;  %v982_v35 = vadd.f32 %v1655_v51, %v2109_v29  ;;  %v973_v36 = vpop.f32.mrb[35].mxu0  ;;  %vm1099_vm5 = vcmp.gt.f32.partialorder %v979_v37, 0.0 }
 0x1f7   :  { %v1129_v40 = vmul.f32 0.01, %v971_v31  ;;  %v974_v57 = vadd.f32 %v2109_v29, %v973_v36  ;;  %vm1097_vm6 = vcmp.gt.f32.partialorder %v971_v31, 0.0 }
 0x1f8   :  { %vm1100_vm7 = vcmp.gt.f32.partialorder %v982_v35, 0.0  ;;  %v1132_v55 = vmul.f32 0.01, %v982_v35  ;;  %v1163_v41 = vsel %vm1099_vm5, %v979_v37, %v1131_v49 }
 0x1f9   :  { %vm1098_vm8 = vcmp.gt.f32.partialorder %v974_v57, 0.0  ;;  %v1130_v30 = vmul.f32 0.01, %v974_v57  ;;  %v1202_v42 = vmul.f32 %v2117_v39, %v1163_v41  ;;  %v1161_v44 = vsel %vm1097_vm6, %v971_v31, %v1129_v40 }
 0x1fa   :  { %v1200_v47 = vmul.f32 %v2117_v39, %v1161_v44  ;;  %v1164_v46 = vsel %vm1100_vm7, %v982_v35, %v1132_v55 }
 0x1fb   :  { %v1238_v10 = vsel %vm887_vm4, %v1202_v42, 0.0  ;;  %v1203_v48 = vmul.f32 %v2117_v39, %v1164_v46  ;;  %v1162_v59 = vsel %vm1098_vm8, %v974_v57, %v1130_v30 }
 0x1fc   :  { %1239 = vadd.xlane.f32.xlu1 %v1238_v10  ;;  %v1232_v34 = vsel %vm887_vm4, %v1200_v47, 0.0  ;;  %v1201_v50 = vmul.f32 %v2117_v39, %v1162_v59 }
 0x1fd   :  { %1233 = vadd.xlane.f32.xlu0 %v1232_v34  ;;  %v1241_v53 = vsel %vm887_vm4, %v1203_v48, 0.0 }
 0x1fe   :  { %v1235_v54 = vsel %vm887_vm4, %v1201_v50, 0.0 }
 0x200   :  { %1242 = vadd.xlane.f32.xlu1 %v1241_v53 }
 0x201   :  { %1236 = vadd.xlane.f32.xlu0 %v1235_v54 }
 0x203   :  { %v1658_v17 = vpop.f32.mrb[36].mxu0 }
 0x204   :  { %v995_v61 = vadd.f32 %v1658_v17, %v2109_v29  ;;  %v986_v62 = vpop.f32.mrb[37].mxu0 }
 0x205   :  { %v987_v43 = vadd.f32 %v2109_v29, %v986_v62  ;;  %v1659_v63 = vpop.f32.mrb[38].mxu0 }
 0x206   :  { %vm1103_vm9 = vcmp.gt.f32.partialorder %v995_v61, 0.0  ;;  %v1135_v0 = vmul.f32 0.01, %v995_v61  ;;  %v998_v1 = vadd.f32 %v1659_v63, %v2109_v29  ;;  %v989_v28 = vpop.f32.mrb[39].mxu0 }
 0x207   :  { %vm1101_vm10 = vcmp.gt.f32.partialorder %v987_v43, 0.0  ;;  %v1133_v2 = vmul.f32 0.01, %v987_v43  ;;  %v990_v3 = vadd.f32 %v2109_v29, %v989_v28 }
 0x208   :  { %vm1104_vm11 = vcmp.gt.f32.partialorder %v998_v1, 0.0  ;;  %v1136_v7 = vmul.f32 0.01, %v998_v1  ;;  %v1167_v11 = vsel %vm1103_vm9, %v995_v61, %v1135_v0 }
 0x209   :  { %vm1102_vm12 = vcmp.gt.f32.partialorder %v990_v3, 0.0  ;;  %v1134_v4 = vmul.f32 0.01, %v990_v3  ;;  %v1206_v33 = vmul.f32 %v2117_v39, %v1167_v11  ;;  %v1165_v45 = vsel %vm1101_vm10, %v987_v43, %v1133_v2 }
 0x20a   :  { %v1168_v16 = vsel %vm1104_vm11, %v998_v1, %v1136_v7  ;;  %v1204_v8 = vmul.f32 %v2117_v39, %v1165_v45 }
 0x20b   :  { %v1250_v5 = vsel %vm887_vm4, %v1206_v33, 0.0  ;;  %v1207_v6 = vmul.f32 %v2117_v39, %v1168_v16  ;;  %v1166_v12 = vsel %vm1102_vm12, %v990_v3, %v1134_v4 }
 0x20c   :  { %1251 = vadd.xlane.f32.xlu0 %v1250_v5  ;;  %v1205_v13 = vmul.f32 %v2117_v39, %v1166_v12  ;;  %v1244_v52 = vsel %vm887_vm4, %v1204_v8, 0.0 }
 0x20d   :  { %v1253_v15 = vsel %vm887_vm4, %v1207_v6, 0.0 }
 0x20e   :  { %1254 = vadd.xlane.f32.xlu1 %v1253_v15  ;;  %v1247_v32 = vsel %vm887_vm4, %v1205_v13, 0.0 }
 0x210   :  { %1245 = vadd.xlane.f32.xlu0 %v1244_v52 }
 0x212   :  { %1248 = vadd.xlane.f32.xlu1 %v1247_v32 }
 0x213   :  { %v1662_v18 = vpop.f32.mrb[40].mxu0 }
 0x214   :  { %v1011_v56 = vadd.f32 %v1662_v18, %v2109_v29  ;;  %v1002_v19 = vpop.f32.mrb[41].mxu0 }
 0x215   :  { %v1003_v20 = vadd.f32 %v2109_v29, %v1002_v19  ;;  %v1663_v21 = vpop.f32.mrb[42].mxu0 }
 0x216   :  { %vm1107_vm13 = vcmp.gt.f32.partialorder %v1011_v56, 0.0  ;;  %v1139_v22 = vmul.f32 0.01, %v1011_v56  ;;  %v1014_v38 = vadd.f32 %v1663_v21, %v2109_v29  ;;  %v1005_v58 = vpop.f32.mrb[43].mxu0 }
 0x217   :  { %vm1105_vm14 = vcmp.gt.f32.partialorder %v1003_v20, 0.0  ;;  %v1137_v23 = vmul.f32 0.01, %v1003_v20  ;;  %v1006_v24 = vadd.f32 %v2109_v29, %v1005_v58 }
 0x218   :  { %vm1108_vm15 = vcmp.gt.f32.partialorder %v1014_v38, 0.0  ;;  %v1140_v9 = vmul.f32 0.01, %v1014_v38  ;;  %v1171_v25 = vsel %vm1107_vm13, %v1011_v56, %v1139_v22 }
 0x219   :  { %vm1106_vm0 = vcmp.gt.f32.partialorder %v1006_v24, 0.0  ;;  %v1138_v26 = vmul.f32 0.01, %v1006_v24  ;;  %v1210_v60 = vmul.f32 %v2117_v39, %v1171_v25  ;;  %v1169_v27 = vsel %vm1105_vm14, %v1003_v20, %v1137_v23 }
 0x21a   :  { %v1172_v37 = vsel %vm1108_vm15, %v1014_v38, %v1140_v9  ;;  %v1208_v51 = vmul.f32 %v2117_v39, %v1169_v27 }
 0x21b   :  { %v1262_v14 = vsel %vm887_vm4, %v1210_v60, 0.0  ;;  %v1211_v31 = vmul.f32 %v2117_v39, %v1172_v37  ;;  %v1170_v49 = vsel %vm1106_vm0, %v1006_v24, %v1138_v26 }
 0x21c   :  { %1263 = vadd.xlane.f32.xlu0 %v1262_v14  ;;  %v1209_v36 = vmul.f32 %v2117_v39, %v1170_v49  ;;  %v1256_v40 = vsel %vm887_vm4, %v1208_v51, 0.0 }
 0x21d   :  { %v1265_v35 = vsel %vm887_vm4, %v1211_v31, 0.0 }
 0x21e   :  { %1266 = vadd.xlane.f32.xlu1 %v1265_v35  ;;  %v1259_v57 = vsel %vm887_vm4, %v1209_v36, 0.0 }
 0x220   :  { %1257 = vadd.xlane.f32.xlu0 %v1256_v40 }
 0x222   :  { %1260 = vadd.xlane.f32.xlu1 %v1259_v57 }
 0x223   :  { %v1666_v55 = vpop.f32.mrb[44].mxu0 }
 0x224   :  { %v1027_v41 = vadd.f32 %v1666_v55, %v2109_v29  ;;  %v1018_v30 = vpop.f32.mrb[45].mxu0 }
 0x225   :  { %v1019_v42 = vadd.f32 %v2109_v29, %v1018_v30  ;;  %v1667_v44 = vpop.f32.mrb[46].mxu0 }
 0x226   :  { %vm1111_vm1 = vcmp.gt.f32.partialorder %v1027_v41, 0.0  ;;  %v1143_v47 = vmul.f32 0.01, %v1027_v41  ;;  %v1030_v46 = vadd.f32 %v1667_v44, %v2109_v29  ;;  %v1021_v10 = vpop.f32.mrb[47].mxu0 }
 0x227   :  { %vm1109_vm2 = vcmp.gt.f32.partialorder %v1019_v42, 0.0  ;;  %v1141_v48 = vmul.f32 0.01, %v1019_v42  ;;  %v1022_v59 = vadd.f32 %v2109_v29, %v1021_v10 }
 0x228   :  { %vm1112_vm3 = vcmp.gt.f32.partialorder %v1030_v46, 0.0  ;;  %v1144_v34 = vmul.f32 0.01, %v1030_v46  ;;  %v1175_v50 = vsel %vm1111_vm1, %v1027_v41, %v1143_v47 }
 0x229   :  { %vm1110_vm5 = vcmp.gt.f32.partialorder %v1022_v59, 0.0  ;;  %v1142_v53 = vmul.f32 0.01, %v1022_v59  ;;  %v1214_v54 = vmul.f32 %v2117_v39, %v1175_v50  ;;  %v1173_v17 = vsel %vm1109_vm2, %v1019_v42, %v1141_v48 }
 0x22a   :  { %v1176_v61 = vsel %vm1112_vm3, %v1030_v46, %v1144_v34  ;;  %v1212_v63 = vmul.f32 %v2117_v39, %v1173_v17 }
 0x22b   :  { %v1274_v62 = vsel %vm887_vm4, %v1214_v54, 0.0  ;;  %v1215_v43 = vmul.f32 %v2117_v39, %v1176_v61  ;;  %v1174_v0 = vsel %vm1110_vm5, %v1022_v59, %v1142_v53 }
 0x22c   :  { %1275 = vadd.xlane.f32.xlu0 %v1274_v62  ;;  %v1213_v28 = vmul.f32 %v2117_v39, %v1174_v0  ;;  %v1268_v2 = vsel %vm887_vm4, %v1212_v63, 0.0 }
 0x22d   :  { %v1277_v1 = vsel %vm887_vm4, %v1215_v43, 0.0 }
 0x22e   :  { %1278 = vadd.xlane.f32.xlu1 %v1277_v1  ;;  %v1271_v3 = vsel %vm887_vm4, %v1213_v28, 0.0 }
 0x230   :  { %1269 = vadd.xlane.f32.xlu0 %v1268_v2 }
 0x232   :  { %1272 = vadd.xlane.f32.xlu1 %v1271_v3 }
 0x233   :  { %v1670_v7 = vpop.f32.mrb[48].mxu0 }
 0x234   :  { %v1043_v11 = vadd.f32 %v1670_v7, %v2109_v29  ;;  %v1034_v4 = vpop.f32.mrb[49].mxu0 }
 0x235   :  { %v1035_v33 = vadd.f32 %v2109_v29, %v1034_v4  ;;  %v1671_v45 = vpop.f32.mrb[50].mxu0 }
 0x236   :  { %vm1115_vm6 = vcmp.gt.f32.partialorder %v1043_v11, 0.0  ;;  %v1147_v16 = vmul.f32 0.01, %v1043_v11  ;;  %v1046_v5 = vadd.f32 %v1671_v45, %v2109_v29  ;;  %v1037_v6 = vpop.f32.mrb[51].mxu0 }
 0x237   :  { %vm1113_vm7 = vcmp.gt.f32.partialorder %v1035_v33, 0.0  ;;  %v1145_v8 = vmul.f32 0.01, %v1035_v33  ;;  %v1038_v12 = vadd.f32 %v2109_v29, %v1037_v6 }
 0x238   :  { %vm1116_vm8 = vcmp.gt.f32.partialorder %v1046_v5, 0.0  ;;  %v1148_v15 = vmul.f32 0.01, %v1046_v5  ;;  %v1179_v13 = vsel %vm1115_vm6, %v1043_v11, %v1147_v16 }
 0x239   :  { %vm1114_vm9 = vcmp.gt.f32.partialorder %v1038_v12, 0.0  ;;  %v1146_v52 = vmul.f32 0.01, %v1038_v12  ;;  %v1218_v32 = vmul.f32 %v2117_v39, %v1179_v13  ;;  %v1177_v18 = vsel %vm1113_vm7, %v1035_v33, %v1145_v8 }
 0x23a   :  { %v1180_v56 = vsel %vm1116_vm8, %v1046_v5, %v1148_v15  ;;  %v1216_v21 = vmul.f32 %v2117_v39, %v1177_v18  ;;  %vm1367_vm7 = vcmask 7168  }
 0x23b   :  { %v1286_v19 = vsel %vm887_vm4, %v1218_v32, 0.0  ;;  %v1219_v20 = vmul.f32 %v2117_v39, %v1180_v56  ;;  %v1178_v22 = vsel %vm1114_vm9, %v1038_v12, %v1146_v52 }
 0x23c   :  { %1287 = vadd.xlane.f32.xlu0 %v1286_v19  ;;  %v1217_v58 = vmul.f32 %v2117_v39, %v1178_v22  ;;  %v1280_v23 = vsel %vm887_vm4, %v1216_v21, 0.0 }
 0x23d   :  { %v1289_v38 = vsel %vm887_vm4, %v1219_v20, 0.0 }
 0x23e   :  { %1290 = vadd.xlane.f32.xlu1 %v1289_v38  ;;  %v1283_v24 = vsel %vm887_vm4, %v1217_v58, 0.0 }
 0x240   :  { %1281 = vadd.xlane.f32.xlu0 %v1280_v23 }
 0x242   :  { %1284 = vadd.xlane.f32.xlu1 %v1283_v24 }
 0x243   :  { %v1674_v9 = vpop.f32.mrb[52].mxu0 }
 0x244   :  { %v1059_v25 = vadd.f32 %v1674_v9, %v2109_v29  ;;  %v1050_v26 = vpop.f32.mrb[53].mxu0 }
 0x245   :  { %v1051_v60 = vadd.f32 %v2109_v29, %v1050_v26  ;;  %v1675_v27 = vpop.f32.mrb[54].mxu0 }
 0x246   :  { %vm1119_vm10 = vcmp.gt.f32.partialorder %v1059_v25, 0.0  ;;  %v1151_v37 = vmul.f32 0.01, %v1059_v25  ;;  %v1062_v14 = vadd.f32 %v1675_v27, %v2109_v29  ;;  %v1053_v31 = vpop.f32.mrb[55].mxu0 }
 0x247   :  { %vm1117_vm11 = vcmp.gt.f32.partialorder %v1051_v60, 0.0  ;;  %v1149_v51 = vmul.f32 0.01, %v1051_v60  ;;  %v1054_v49 = vadd.f32 %v2109_v29, %v1053_v31 }
 0x248   :  { %vm1120_vm12 = vcmp.gt.f32.partialorder %v1062_v14, 0.0  ;;  %v1152_v35 = vmul.f32 0.01, %v1062_v14  ;;  %v1183_v36 = vsel %vm1119_vm10, %v1059_v25, %v1151_v37 }
 0x249   :  { %vm1118_vm13 = vcmp.gt.f32.partialorder %v1054_v49, 0.0  ;;  %v1150_v40 = vmul.f32 0.01, %v1054_v49  ;;  %v1222_v57 = vmul.f32 %v2117_v39, %v1183_v36  ;;  %v1181_v55 = vsel %vm1117_vm11, %v1051_v60, %v1149_v51 }
 0x24a   :  { %v1184_v41 = vsel %vm1120_vm12, %v1062_v14, %v1152_v35  ;;  %v1220_v44 = vmul.f32 %v2117_v39, %v1181_v55 }
 0x24b   :  { %v1298_v30 = vsel %vm887_vm4, %v1222_v57, 0.0  ;;  %v1223_v42 = vmul.f32 %v2117_v39, %v1184_v41  ;;  %v1182_v47 = vsel %vm1118_vm13, %v1054_v49, %v1150_v40  ;;  %v2212_v49 = vld [vmem:[#allocation2] ss:$0 sm:$0xff] }
 0x24c   :  { %1299 = vadd.xlane.f32.xlu0 %v1298_v30  ;;  %v1221_v10 = vmul.f32 %v2117_v39, %v1182_v47  ;;  %v1292_v48 = vsel %vm887_vm4, %v1220_v44, 0.0 }
 0x24d   :  { %v1301_v46 = vsel %vm887_vm4, %v1223_v42, 0.0 }
 0x24e   :  { %1302 = vadd.xlane.f32.xlu1 %v1301_v46  ;;  %v1295_v59 = vsel %vm887_vm4, %v1221_v10, 0.0 }
 0x250   :  { %1293 = vadd.xlane.f32.xlu0 %v1292_v48 }
 0x252   :  { %1296 = vadd.xlane.f32.xlu1 %v1295_v59 }
 0x253   :  { %v1678_v34 = vpop.f32.mrb[56].mxu0 }
 0x254   :  { %v1075_v50 = vadd.f32 %v1678_v34, %v2109_v29  ;;  %v1066_v53 = vpop.f32.mrb[57].mxu0 }
 0x255   :  { %v1067_v54 = vadd.f32 %v2109_v29, %v1066_v53  ;;  %v1679_v17 = vpop.f32.mrb[58].mxu0 }
 0x256   :  { %vm1123_vm14 = vcmp.gt.f32.partialorder %v1075_v50, 0.0  ;;  %v1155_v61 = vmul.f32 0.01, %v1075_v50  ;;  %v1078_v62 = vadd.f32 %v1679_v17, %v2109_v29  ;;  %v1069_v43 = vpop.f32.mrb[59].mxu0 }
 0x257   :  { %vm1121_vm15 = vcmp.gt.f32.partialorder %v1067_v54, 0.0  ;;  %v1153_v63 = vmul.f32 0.01, %v1067_v54  ;;  %v1070_v0 = vadd.f32 %v2109_v29, %v1069_v43 }
 0x258   :  { %vm1124_vm0 = vcmp.gt.f32.partialorder %v1078_v62, 0.0  ;;  %v1156_v1 = vmul.f32 0.01, %v1078_v62  ;;  %v1187_v28 = vsel %vm1123_vm14, %v1075_v50, %v1155_v61 }
 0x259   :  { %vm1122_vm1 = vcmp.gt.f32.partialorder %v1070_v0, 0.0  ;;  %v1154_v2 = vmul.f32 0.01, %v1070_v0  ;;  %v1226_v3 = vmul.f32 %v2117_v39, %v1187_v28  ;;  %v1185_v7 = vsel %vm1121_vm15, %v1067_v54, %v1153_v63 }
 0x25a   :  { %v1188_v11 = vsel %vm1124_vm0, %v1078_v62, %v1156_v1  ;;  %v1224_v45 = vmul.f32 %v2117_v39, %v1185_v7 }
 0x25b   :  { %v1310_v4 = vsel %vm887_vm4, %v1226_v3, 0.0  ;;  %v1227_v33 = vmul.f32 %v2117_v39, %v1188_v11  ;;  %v1186_v16 = vsel %vm1122_vm1, %v1070_v0, %v1154_v2 }
 0x25c   :  { %1311 = vadd.xlane.f32.xlu0 %v1310_v4  ;;  %v1225_v6 = vmul.f32 %v2117_v39, %v1186_v16  ;;  %v1304_v8 = vsel %vm887_vm4, %v1224_v45, 0.0 }
 0x25d   :  { %v1313_v5 = vsel %vm887_vm4, %v1227_v33, 0.0 }
 0x25e   :  { %1314 = vadd.xlane.f32.xlu1 %v1313_v5  ;;  %v1307_v12 = vsel %vm887_vm4, %v1225_v6, 0.0 }
 0x260   :  { %1305 = vadd.xlane.f32.xlu0 %v1304_v8 }
 0x262   :  { %1308 = vadd.xlane.f32.xlu1 %v1307_v12 }
 0x263   :  { %v1682_v15 = vpop.f32.mrb[60].mxu0 }
 0x264   :  { %v1091_v13 = vadd.f32 %v1682_v15, %v2109_v29  ;;  %v1082_v52 = vpop.f32.mrb[61].mxu0 }
 0x265   :  { %v1083_v32 = vadd.f32 %v2109_v29, %v1082_v52  ;;  %v1683_v18 = vpop.f32.mrb[62].mxu0 }
 0x266   :  { %vm1127_vm2 = vcmp.gt.f32.partialorder %v1091_v13, 0.0  ;;  %v1159_v56 = vmul.f32 0.01, %v1091_v13  ;;  %v1094_v19 = vadd.f32 %v1683_v18, %v2109_v29  ;;  %v1085_v20 = vpop.f32.mrb[63].mxu0 }
 0x267   :  { %vm1125_vm3 = vcmp.gt.f32.partialorder %v1083_v32, 0.0  ;;  %v1157_v21 = vmul.f32 0.01, %v1083_v32  ;;  %v1086_v22 = vadd.f32 %v2109_v29, %v1085_v20 }
 0x268   :  { %vm1128_vm5 = vcmp.gt.f32.partialorder %v1094_v19, 0.0  ;;  %v1160_v38 = vmul.f32 0.01, %v1094_v19  ;;  %v1191_v24 = vsel %vm1127_vm2, %v1091_v13, %v1159_v56 }
 0x269   :  { %vm1126_vm6 = vcmp.gt.f32.partialorder %v1086_v22, 0.0  ;;  %v1158_v58 = vmul.f32 0.01, %v1086_v22  ;;  %v1189_v23 = vsel %vm1125_vm3, %v1083_v32, %v1157_v21  ;;  %v1230_v37 = vmul.f32 %v2117_v39, %v1191_v24 }
 0x26a   :  { %v1228_v9 = vmul.f32 %v2117_v39, %v1189_v23  ;;  %v1192_v26 = vsel %vm1128_vm5, %v1094_v19, %v1160_v38 }
 0x26b   :  { %v1190_v25 = vsel %vm1126_vm6, %v1086_v22, %v1158_v58  ;;  %v1231_v29 = vmul.f32 %v2117_v39, %v1192_v26  ;;  %v1322_v31 = vsel %vm887_vm4, %v1230_v37, 0.0 }
 0x26c   :  { %v1316_v60 = vsel %vm887_vm4, %v1228_v9, 0.0  ;;  %v1229_v27 = vmul.f32 %v2117_v39, %v1190_v25 }
 0x26d   :  { %1317 = vadd.xlane.f32.xlu0 %v1316_v60  ;;  %v1325_v51 = vsel %vm887_vm4, %v1231_v29, 0.0 }
 0x26e   :  { %v1319_v14 = vsel %vm887_vm4, %v1229_v27, 0.0 }
 0x26f   :  { %1320 = vadd.xlane.f32.xlu1 %v1319_v14 }
 0x271   :  { %1323 = vadd.xlane.f32.xlu0 %v1322_v31 }
 0x273   :  { %1326 = vadd.xlane.f32.xlu1 %v1325_v51 }
 0x289   :  { %v1240_v35 = vpop.xlane.xlu1 %1239 }
 0x28a   :  { %v1337_v36 = vadd.f32 %v2212_v49, %v1240_v35  ;;  %v1234_v40 = vpop.xlane.xlu0 %1233 }
 0x28b   :  { %v1335_v57 = vadd.f32 %v2212_v49, %v1234_v40 }
 0x28c   :  { %1370 = vst.msk [vmem:[%s2383_s9 + $0x10] sm:$0xff] %vm1367_vm7, %v1337_v36 }
 0x28d   :  { %1368 = vst.msk [vmem:[%s2383_s9] sm:$0xff] %vm1367_vm7, %v1335_v57  ;;  %v1243_v39 = vpop.xlane.xlu1 %1242 }
 0x28e   :  { %v1338_v55 = vadd.f32 %v2212_v49, %v1243_v39  ;;  %v1237_v41 = vpop.xlane.xlu0 %1236 }
 0x28f   :  { %v1336_v30 = vadd.f32 %v2212_v49, %v1237_v41 }
 0x290   :  { %1371 = vst.msk [vmem:[%s2383_s9 + $0x18] sm:$0xff] %vm1367_vm7, %v1338_v55 }
 0x291   :  { %1369 = vst.msk [vmem:[%s2383_s9 + $0x8] sm:$0xff] %vm1367_vm7, %v1336_v30 }
 0x299   :  { %v1252_v42 = vpop.xlane.xlu0 %1251 }
 0x29a   :  { %v1341_v44 = vadd.f32 %v2212_v49, %v1252_v42 }
 0x29b   :  { %v1255_v47 = vpop.xlane.xlu1 %1254 }
 0x29c   :  { %1374 = vst.msk [vmem:[%s2383_s9 + $0x30] sm:$0xff] %vm1367_vm7, %v1341_v44  ;;  %v1342_v46 = vadd.f32 %v2212_v49, %v1255_v47 }
 0x29d   :  { %v1246_v10 = vpop.xlane.xlu0 %1245 }
 0x29e   :  { %1375 = vst.msk [vmem:[%s2383_s9 + $0x38] sm:$0xff] %vm1367_vm7, %v1342_v46  ;;  %v1339_v48 = vadd.f32 %v2212_v49, %v1246_v10 }
 0x29f   :  { %v1249_v59 = vpop.xlane.xlu1 %1248 }
 0x2a0   :  { %1372 = vst.msk [vmem:[%s2383_s9 + $0x20] sm:$0xff] %vm1367_vm7, %v1339_v48  ;;  %v1340_v34 = vadd.f32 %v2212_v49, %v1249_v59 }
 0x2a2   :  { %1373 = vst.msk [vmem:[%s2383_s9 + $0x28] sm:$0xff] %vm1367_vm7, %v1340_v34 }
 0x2a9   :  { %v1264_v50 = vpop.xlane.xlu0 %1263 }
 0x2aa   :  { %v1345_v53 = vadd.f32 %v2212_v49, %v1264_v50 }
 0x2ab   :  { %v1267_v54 = vpop.xlane.xlu1 %1266 }
 0x2ac   :  { %1378 = vst.msk [vmem:[%s2383_s9 + $0x50] sm:$0xff] %vm1367_vm7, %v1345_v53  ;;  %v1346_v17 = vadd.f32 %v2212_v49, %v1267_v54 }
 0x2ad   :  { %v1258_v61 = vpop.xlane.xlu0 %1257 }
 0x2ae   :  { %1379 = vst.msk [vmem:[%s2383_s9 + $0x58] sm:$0xff] %vm1367_vm7, %v1346_v17  ;;  %v1343_v62 = vadd.f32 %v2212_v49, %v1258_v61 }
 0x2af   :  { %v1261_v43 = vpop.xlane.xlu1 %1260 }
 0x2b0   :  { %1376 = vst.msk [vmem:[%s2383_s9 + $0x40] sm:$0xff] %vm1367_vm7, %v1343_v62  ;;  %v1344_v63 = vadd.f32 %v2212_v49, %v1261_v43 }
 0x2b2   :  { %1377 = vst.msk [vmem:[%s2383_s9 + $0x48] sm:$0xff] %vm1367_vm7, %v1344_v63 }
 0x2b9   :  { %v1276_v0 = vpop.xlane.xlu0 %1275 }
 0x2ba   :  { %v1349_v1 = vadd.f32 %v2212_v49, %v1276_v0 }
 0x2bb   :  { %v1279_v28 = vpop.xlane.xlu1 %1278 }
 0x2bc   :  { %1382 = vst.msk [vmem:[%s2383_s9 + $0x70] sm:$0xff] %vm1367_vm7, %v1349_v1  ;;  %v1350_v2 = vadd.f32 %v2212_v49, %v1279_v28 }
 0x2bd   :  { %v1270_v3 = vpop.xlane.xlu0 %1269 }
 0x2be   :  { %1383 = vst.msk [vmem:[%s2383_s9 + $0x78] sm:$0xff] %vm1367_vm7, %v1350_v2  ;;  %v1347_v7 = vadd.f32 %v2212_v49, %v1270_v3 }
 0x2bf   :  { %v1273_v11 = vpop.xlane.xlu1 %1272 }
 0x2c0   :  { %1380 = vst.msk [vmem:[%s2383_s9 + $0x60] sm:$0xff] %vm1367_vm7, %v1347_v7  ;;  %v1348_v4 = vadd.f32 %v2212_v49, %v1273_v11 }
 0x2c2   :  { %1381 = vst.msk [vmem:[%s2383_s9 + $0x68] sm:$0xff] %vm1367_vm7, %v1348_v4 }
 0x2c9   :  { %v1288_v33 = vpop.xlane.xlu0 %1287 }
 0x2ca   :  { %v1353_v45 = vadd.f32 %v2212_v49, %v1288_v33 }
 0x2cb   :  { %v1291_v16 = vpop.xlane.xlu1 %1290 }
 0x2cc   :  { %1386 = vst.msk [vmem:[%s2383_s9 + $0x90] sm:$0xff] %vm1367_vm7, %v1353_v45  ;;  %v1354_v5 = vadd.f32 %v2212_v49, %v1291_v16 }
 0x2cd   :  { %v1282_v6 = vpop.xlane.xlu0 %1281 }
 0x2ce   :  { %1387 = vst.msk [vmem:[%s2383_s9 + $0x98] sm:$0xff] %vm1367_vm7, %v1354_v5  ;;  %v1351_v8 = vadd.f32 %v2212_v49, %v1282_v6 }
 0x2cf   :  { %v1285_v12 = vpop.xlane.xlu1 %1284 }
 0x2d0   :  { %1384 = vst.msk [vmem:[%s2383_s9 + $0x80] sm:$0xff] %vm1367_vm7, %v1351_v8  ;;  %v1352_v15 = vadd.f32 %v2212_v49, %v1285_v12 }
 0x2d2   :  { %1385 = vst.msk [vmem:[%s2383_s9 + $0x88] sm:$0xff] %vm1367_vm7, %v1352_v15 }
 0x2d9   :  { %v1300_v13 = vpop.xlane.xlu0 %1299 }
 0x2da   :  { %v1357_v52 = vadd.f32 %v2212_v49, %v1300_v13 }
 0x2db   :  { %v1303_v32 = vpop.xlane.xlu1 %1302 }
 0x2dc   :  { %1390 = vst.msk [vmem:[%s2383_s9 + $0xb0] sm:$0xff] %vm1367_vm7, %v1357_v52  ;;  %v1358_v18 = vadd.f32 %v2212_v49, %v1303_v32 }
 0x2dd   :  { %v1294_v56 = vpop.xlane.xlu0 %1293 }
 0x2de   :  { %1391 = vst.msk [vmem:[%s2383_s9 + $0xb8] sm:$0xff] %vm1367_vm7, %v1358_v18  ;;  %v1355_v19 = vadd.f32 %v2212_v49, %v1294_v56 }
 0x2df   :  { %v1297_v20 = vpop.xlane.xlu1 %1296 }
 0x2e0   :  { %1388 = vst.msk [vmem:[%s2383_s9 + $0xa0] sm:$0xff] %vm1367_vm7, %v1355_v19  ;;  %v1356_v21 = vadd.f32 %v2212_v49, %v1297_v20 }
 0x2e2   :  { %1389 = vst.msk [vmem:[%s2383_s9 + $0xa8] sm:$0xff] %vm1367_vm7, %v1356_v21 }
 0x2e9   :  { %v1312_v22 = vpop.xlane.xlu0 %1311 }
 0x2ea   :  { %v1361_v38 = vadd.f32 %v2212_v49, %v1312_v22 }
 0x2eb   :  { %v1315_v58 = vpop.xlane.xlu1 %1314 }
 0x2ec   :  { %1394 = vst.msk [vmem:[%s2383_s9 + $0xd0] sm:$0xff] %vm1367_vm7, %v1361_v38  ;;  %v1362_v23 = vadd.f32 %v2212_v49, %v1315_v58 }
 0x2ed   :  { %v1306_v24 = vpop.xlane.xlu0 %1305 }
 0x2ee   :  { %1395 = vst.msk [vmem:[%s2383_s9 + $0xd8] sm:$0xff] %vm1367_vm7, %v1362_v23  ;;  %v1359_v9 = vadd.f32 %v2212_v49, %v1306_v24 }
 0x2ef   :  { %v1309_v25 = vpop.xlane.xlu1 %1308 }
 0x2f0   :  { %1392 = vst.msk [vmem:[%s2383_s9 + $0xc0] sm:$0xff] %vm1367_vm7, %v1359_v9  ;;  %v1360_v26 = vadd.f32 %v2212_v49, %v1309_v25 }
 0x2f2   :  { %1393 = vst.msk [vmem:[%s2383_s9 + $0xc8] sm:$0xff] %vm1367_vm7, %v1360_v26 }
 0x2fa   :  { %v1318_v60 = vpop.xlane.xlu0 %1317 }
 0x2fb   :  { %v1363_v27 = vadd.f32 %v2212_v49, %v1318_v60 }
 0x2fc   :  { %v1321_v37 = vpop.xlane.xlu1 %1320 }
 0x2fd   :  { %1396 = vst.msk [vmem:[%s2383_s9 + $0xe0] sm:$0xff] %vm1367_vm7, %v1363_v27  ;;  %v1364_v14 = vadd.f32 %v2212_v49, %v1321_v37 }
 0x2fe   :  { %v1324_v29 = vpop.xlane.xlu0 %1323 }
 0x2ff   :  { %1397 = vst.msk [vmem:[%s2383_s9 + $0xe8] sm:$0xff] %vm1367_vm7, %v1364_v14  ;;  %v1365_v31 = vadd.f32 %v2212_v49, %v1324_v29 }
 0x300   :  { %v1327_v51 = vpop.xlane.xlu1 %1326 }
 0x301   :  { %1398 = vst.msk [vmem:[%s2383_s9 + $0xf0] sm:$0xff] %vm1367_vm7, %v1365_v31  ;;  %v1366_v35 = vadd.f32 %v2212_v49, %v1327_v51 }
 0x303   :  { %1399 = vst.msk [vmem:[%s2383_s9 + $0xf8] sm:$0xff] %vm1367_vm7, %v1366_v35 }
 0x304   :  { %1404 = vsyncpa [#allocation4], 1 }

</bundles_post_ra>
